<compile_context>
chip_gen: v7x
topology: tpu7x:2x2x1
jax: 0.10.0
libtpu: 0.0.40
codegen_flags: <defaults>
</compile_context>

<pallas_src>
import jax
import jax.numpy as jnp
from jax.experimental import pallas as pl
from jax.experimental.pallas import tpu as pltpu

_K = 5                       # nn.Conv2d(..., 5, padding=2)
_P = (_K - 1) // 2
_NB_TARGET = 32              # images per grid step (review target: NB ~ 8-32)

_KERNEL_PARAM_ORDER = (
    "conv1_band", "conv1_b", "conv2_band", "conv2_b",
    "fc1_w", "fc1_b", "fc2_w", "fc2_b", "fc3_w", "fc3_b",
)


def _cdiv(a, b):
    return -(-a // b)


_TC_COUNT = None


def _tensorcore_count():
    """Best-effort TensorCore count (v7x has 2 per chip); defaults to 1."""
    global _TC_COUNT
    if _TC_COUNT is None:
        n = 1
        try:
            info = pltpu.get_tpu_info()
            for name in ("num_cores", "core_count", "num_tensorcores",
                         "tensorcore_count", "tensor_cores_per_chip"):
                v = getattr(info, name, None)
                if isinstance(v, int) and v > 0:
                    n = v
                    break
        except Exception:
            n = 1
        _TC_COUNT = n
    return _TC_COUNT


# ----------------------------------------------------------------------------
# Fused kernel: one grid step processes NB images end-to-end, all in VMEM.
# ----------------------------------------------------------------------------
def _lenet_kernel(x_ref, band1_ref, cb1_ref, band2_ref, cb2_ref,
                  fc1w_ref, fc1b_ref, fc2w_ref, fc2b_ref, fc3w_ref, fc3b_ref,
                  o_ref, pad1_ref, act1_ref, pad2_ref, act2_ref, p2_ref):
    f32 = jnp.float32
    NB, H, L0 = x_ref.shape                 # L0 = Cin * W   (48)
    L1 = cb1_ref.shape[-1]                  # C1  * W        (96)
    L2 = cb2_ref.shape[-1]                  # C2  * W/2      (128)
    H2, H4 = H // 2, H // 4

    # ---- conv1: K banded matmuls (width padding folded into band weights) ----
    # Zero only the 2-row halos; interior is always overwritten.  Done every
    # step (not just program_id==0) so it stays correct when the "parallel"
    # grid axis is split across TensorCores with per-core scratch.
    pad1_ref[:, :_P, :] = jnp.zeros((NB, _P, L0), f32)
    pad1_ref[:, _P + H:, :] = jnp.zeros((NB, _P, L0), f32)
    pad1_ref[:, _P:_P + H, :] = x_ref[...].astype(f32)

    acc1 = jnp.dot(pad1_ref[:, 0:H, :].reshape(NB * H, L0), band1_ref[0],
                   preferred_element_type=f32)
    for kh in range(1, _K):
        tap = pad1_ref[:, kh:kh + H, :].reshape(NB * H, L0)
        acc1 = acc1 + jnp.dot(tap, band1_ref[kh], preferred_element_type=f32)
    act1_ref[...] = jnp.maximum(acc1 + cb1_ref[...], 0.0)

    # 2x2 max-pool #1: rows via strided sublane loads; columns via an
    # adjacent-lane max (even-lane selection is folded into band2's zero rows).
    yh1 = jnp.maximum(act1_ref[pl.ds(0, NB * H2, 2), :],
                      act1_ref[pl.ds(1, NB * H2, 2), :])          # (NB*H2, L1)
    p1 = jnp.maximum(yh1[:, :L1 - 1], yh1[:, 1:])                 # (NB*H2, L1-1)

    # ---- conv2 ----
    Lp = L1 - 1
    pad2_ref[:, :_P, :] = jnp.zeros((NB, _P, Lp), f32)
    pad2_ref[:, _P + H2:, :] = jnp.zeros((NB, _P, Lp), f32)
    pad2_ref[:, _P:_P + H2, :] = p1.reshape(NB, H2, Lp)

    acc2 = jnp.dot(pad2_ref[:, 0:H2, :].reshape(NB * H2, Lp), band2_ref[0],
                   preferred_element_type=f32)
    for kh in range(1, _K):
        tap = pad2_ref[:, kh:kh + H2, :].reshape(NB * H2, Lp)
        acc2 = acc2 + jnp.dot(tap, band2_ref[kh], preferred_element_type=f32)
    act2_ref[...] = jnp.maximum(acc2 + cb2_ref[...], 0.0)

    # 2x2 max-pool #2 (even-lane selection folded into fc1's zero rows).
    yh2 = jnp.maximum(act2_ref[pl.ds(0, NB * H4, 2), :],
                      act2_ref[pl.ds(1, NB * H4, 2), :])          # (NB*H4, L2)
    p2_ref[...] = jnp.maximum(yh2[:, :L2 - 1], yh2[:, 1:])        # (NB*H4, L2-1)

    # ---- FC head: fc1 consumes one (NB, L2-1) slab per pooled row (strided
    #      loads); its weights were reordered / zero-padded once in the wrapper.
    z = jnp.dot(p2_ref[pl.ds(0, NB, H4), :], fc1w_ref[0],
                preferred_element_type=f32)
    for h4 in range(1, H4):
        z = z + jnp.dot(p2_ref[pl.ds(h4, NB, H4), :], fc1w_ref[h4],
                        preferred_element_type=f32)
    z = jnp.maximum(z + fc1b_ref[...], 0.0)
    z = jnp.maximum(jnp.dot(z, fc2w_ref[...], preferred_element_type=f32)
                    + fc2b_ref[...], 0.0)
    z = jnp.dot(z, fc3w_ref[...], preferred_element_type=f32) + fc3b_ref[...]
    o_ref[...] = jnp.tanh(z).astype(o_ref.dtype)


# ----------------------------------------------------------------------------
# Wrapper: batch chunking, BlockSpecs, scratch.
# ----------------------------------------------------------------------------
@jax.jit
def network_forward(x_nchw, kparams):
    """x_nchw: (N, 3, H, W); kparams from prepare_kernel_params."""
    N, Cin, H, W = x_nchw.shape
    assert H % 4 == 0 and W % 4 == 0, "spatial dims must be divisible by 4"
    out_dim = kparams["fc3_w"].shape[1]

    # Lane-dense input layout: rows = (n, h), lanes = (c, w).
    x = jnp.transpose(x_nchw.astype(jnp.float32),
                      (0, 2, 1, 3)).reshape(N, H, Cin * W)

    # Images per grid step: large enough to fill MXU sublanes and amortize the
    # ~0.35us per-step overhead, a multiple of 8 whenever there is more than
    # one step, and split across >=2 "parallel" steps on multi-TC chips without
    # ever dropping below 8 images per step.  (Total VMEM use is ~3 MB at
    # NB=32, far under the 32 MiB default scoped limit on every generation.)
    if N <= _NB_TARGET:
        NB, num_steps = N, 1
    else:
        num_steps = _cdiv(N, _NB_TARGET)
        NB = 8 * _cdiv(_cdiv(N, num_steps), 8)
        num_steps = _cdiv(N, NB)
    n_tc = _tensorcore_count()
    if n_tc > 1 and num_steps < n_tc and N >= 16:
        NB = 8 * _cdiv(_cdiv(N, n_tc), 8)
        num_steps = _cdiv(N, NB)

    N_pad = num_steps * NB
    if N_pad != N:
        x = jnp.concatenate(
            [x, jnp.zeros((N_pad - N, H, Cin * W), x.dtype)], axis=0)

    weights = [kparams[k] for k in _KERNEL_PARAM_ORDER]
    C1W = kparams["conv1_b"].shape[-1]           # 6 * W
    C2W2 = kparams["conv2_b"].shape[-1]          # 16 * W/2

    in_specs = [pl.BlockSpec((NB, H, Cin * W), lambda i: (i, 0, 0))]
    in_specs += [pl.BlockSpec(w.shape, lambda i, n=w.ndim: (0,) * n)
                 for w in weights]

    out = pl.pallas_call(
        _lenet_kernel,
        out_shape=jax.ShapeDtypeStruct((N_pad, out_dim), jnp.float32),
        grid=(num_steps,),
        in_specs=in_specs,
        out_specs=pl.BlockSpec((NB, out_dim), lambda i: (i, 0)),
        scratch_shapes=[
            pltpu.VMEM((NB, H + 2 * _P, Cin * W), jnp.float32),        # pad1
            pltpu.VMEM((NB * H, C1W), jnp.float32),                    # act1
            pltpu.VMEM((NB, H // 2 + 2 * _P, C1W - 1), jnp.float32),   # pad2
            pltpu.VMEM((NB * (H // 2), C2W2), jnp.float32),            # act2
            pltpu.VMEM((NB * (H // 4), C2W2 - 1), jnp.float32),        # pooled2
        ],
        compiler_params=pltpu.CompilerParams(
            dimension_semantics=("parallel",)),
    )(x, *weights)
    return out[:N]


# ----------------------------------------------------------------------------
# One-time conversion of PyTorch-layout params into kernel layout.
# ----------------------------------------------------------------------------
def _conv_band_weights(w, out_w, c_stride, w_stride, in_lanes):
    """Fold a KxK 'SAME' conv (stride 1) along width into K banded matmuls.

    Returns (K, in_lanes, Cout*out_w) with
      band[kh, c*c_stride + wi*w_stride, co*out_w + wo] = w[co, c, kh, wi-wo+P]
    and zeros outside the kernel support / for unused input lanes.
    """
    w = jnp.asarray(w, jnp.float32)
    cout, cin, K, _ = w.shape
    P = (K - 1) // 2
    wi = jnp.arange(out_w)[:, None]
    wo = jnp.arange(out_w)[None, :]
    kw = wi - wo + P
    valid = ((kw >= 0) & (kw < K)).astype(jnp.float32)
    kw_c = jnp.clip(kw, 0, K - 1)
    w_perm = jnp.transpose(w, (2, 1, 0, 3))                 # (K, cin, cout, K)
    tap = w_perm[:, :, :, kw_c] * valid[None, None, None]   # (K,cin,cout,wi,wo)
    tap = jnp.transpose(tap, (0, 1, 3, 2, 4)).reshape(K, cin * out_w,
                                                      cout * out_w)
    lanes = (jnp.arange(cin)[:, None] * c_stride
             + jnp.arange(out_w)[None, :] * w_stride).reshape(-1)
    band = jnp.zeros((K, in_lanes, cout * out_w), jnp.float32)
    return band.at[:, lanes, :].set(tap)


def prepare_kernel_params(params, image_dims):
    Cin, Hi, Wi = image_dims
    W2, H4, W4 = Wi // 2, Hi // 4, Wi // 4
    C1 = params["conv1_w"].shape[0]
    C2 = params["conv2_w"].shape[0]
    n_fc1 = params["fc1_w"].shape[0]

    band1 = _conv_band_weights(params["conv1_w"], out_w=Wi, c_stride=Wi,
                               w_stride=1, in_lanes=Cin * Wi)
    # conv2 reads conv1's pooled rows at their un-compressed lane positions
    # (lane = c*Wi + 2*w); its band has C1*Wi-1 rows with odd rows all-zero.
    band2 = _conv_band_weights(params["conv2_w"], out_w=W2, c_stride=Wi,
                               w_stride=2, in_lanes=C1 * Wi - 1)

    # fc1: torch columns are (c, h, w); the kernel hands fc1 one (NB, C2*W2-1)
    # slab per pooled row h, with valid data at lane c*W2 + 2*w.
    fc1 = jnp.asarray(params["fc1_w"], jnp.float32).reshape(n_fc1, C2, H4, W4)
    fc1 = jnp.transpose(fc1, (2, 1, 3, 0)).reshape(H4, C2 * W4, n_fc1)
    lanes = (jnp.arange(C2)[:, None] * W2
             + jnp.arange(W4)[None, :] * 2).reshape(-1)
    fc1k = jnp.zeros((H4, C2 * W2 - 1, n_fc1), jnp.float32
                     ).at[:, lanes, :].set(fc1)

    return {
        "conv1_band": band1,
        "conv1_b": jnp.repeat(jnp.asarray(params["conv1_b"], jnp.float32),
                              Wi).reshape(1, C1 * Wi),
        "conv2_band": band2,
        "conv2_b": jnp.repeat(jnp.asarray(params["conv2_b"], jnp.float32),
                              W2).reshape(1, C2 * W2),
        "fc1_w": fc1k,
        "fc1_b": jnp.asarray(params["fc1_b"], jnp.float32).reshape(1, -1),
        "fc2_w": jnp.asarray(params["fc2_w"], jnp.float32).T,
        "fc2_b": jnp.asarray(params["fc2_b"], jnp.float32).reshape(1, -1),
        "fc3_w": jnp.asarray(params["fc3_w"], jnp.float32).T,
        "fc3_b": jnp.asarray(params["fc3_b"], jnp.float32).reshape(1, -1),
    }


# ----------------------------------------------------------------------------
# PyTorch-layout init + pure-JAX reference (matches the PyTorch module).
# ----------------------------------------------------------------------------
def init_params(key, image_dims, output_dims):
    Cin, Hi, Wi = image_dims
    linear_size = 16 * (Hi // 4) * (Wi // 4)
    ks = jax.random.split(key, 10)
    s = 0.1
    return {
        "conv1_w": s * jax.random.normal(ks[0], (6, Cin, _K, _K), jnp.float32),
        "conv1_b": s * jax.random.normal(ks[1], (6,), jnp.float32),
        "conv2_w": s * jax.random.normal(ks[2], (16, 6, _K, _K), jnp.float32),
        "conv2_b": s * jax.random.normal(ks[3], (16,), jnp.float32),
        "fc1_w": s * jax.random.normal(ks[4], (120, linear_size), jnp.float32),
        "fc1_b": s * jax.random.normal(ks[5], (120,), jnp.float32),
        "fc2_w": s * jax.random.normal(ks[6], (84, 120), jnp.float32),
        "fc2_b": s * jax.random.normal(ks[7], (84,), jnp.float32),
        "fc3_w": s * jax.random.normal(ks[8], (output_dims, 84), jnp.float32),
        "fc3_b": s * jax.random.normal(ks[9], (output_dims,), jnp.float32),
    }


@jax.jit
def reference_forward(x_nchw, params):
    def conv(x, w, b):
        y = jax.lax.conv_general_dilated(
            x, w, window_strides=(1, 1), padding=((2, 2), (2, 2)),
            dimension_numbers=("NCHW", "OIHW", "NCHW"))
        return y + b.reshape(1, -1, 1, 1)

    def pool(x):
        return jax.lax.reduce_window(
            x, -jnp.inf, jax.lax.max, (1, 1, 2, 2), (1, 1, 2, 2), "VALID")

    x = pool(jax.nn.relu(conv(x_nchw, params["conv1_w"], params["conv1_b"])))
    x = pool(jax.nn.relu(conv(x, params["conv2_w"], params["conv2_b"])))
    x = x.reshape(x.shape[0], -1)
    x = jax.nn.relu(x @ params["fc1_w"].T + params["fc1_b"])
    x = jax.nn.relu(x @ params["fc2_w"].T + params["fc2_b"])
    x = x @ params["fc3_w"].T + params["fc3_b"]
    return jnp.tanh(x)


if __name__ == "__main__":
    image_dims = (3, 16, 16)        # module hard-codes Conv2d(3, ...)
    output_dims = 10

    key = jax.random.PRNGKey(0)
    pkey, k1, k2, k3 = jax.random.split(key, 4)
    params = init_params(pkey, image_dims, output_dims)
    kparams = prepare_kernel_params(params, image_dims)

    # Single-step path (small batch).
    x = jax.random.normal(k1, (2,) + image_dims, jnp.float32)
    out = jax.block_until_ready(network_forward(x, kparams))
    ref = jax.block_until_ready(reference_forward(x, params))
    assert out.shape == (2, output_dims), out.shape
    assert jnp.all(jnp.isfinite(out))
    assert jnp.allclose(out, ref, atol=2e-3, rtol=2e-3), (
        f"max abs diff {jnp.max(jnp.abs(out - ref))}")

    # Odd batch (still single step, exercises NB not multiple of 8).
    x2 = jax.random.normal(k2, (5,) + image_dims, jnp.float32)
    out2 = jax.block_until_ready(network_forward(x2, kparams))
    ref2 = jax.block_until_ready(reference_forward(x2, params))
    assert jnp.allclose(out2, ref2, atol=2e-3, rtol=2e-3), (
        f"max abs diff {jnp.max(jnp.abs(out2 - ref2))}")

    # Larger batch: multi-step grid, scratch reuse across steps, batch padding.
    x3 = jax.random.normal(k3, (48,) + image_dims, jnp.float32)
    out3 = jax.block_until_ready(network_forward(x3, kparams))
    ref3 = jax.block_until_ready(reference_forward(x3, params))
    assert out3.shape == (48, output_dims), out3.shape
    assert jnp.allclose(out3, ref3, atol=2e-3, rtol=2e-3), (
        f"max abs diff {jnp.max(jnp.abs(out3 - ref3))}")

    print("KERNEL_OK")
</pallas_src>

<mosaic_0001>
module attributes {stable_mosaic.version = 11 : i64} {
  func.func @_lenet_kernel(%arg0: i32, %arg1: memref<2x16x48xf32, #tpu.memory_space<vmem>>, %arg2: memref<5x48x96xf32, #tpu.memory_space<vmem>>, %arg3: memref<1x96xf32, #tpu.memory_space<vmem>>, %arg4: memref<5x95x128xf32, #tpu.memory_space<vmem>>, %arg5: memref<1x128xf32, #tpu.memory_space<vmem>>, %arg6: memref<4x127x120xf32, #tpu.memory_space<vmem>>, %arg7: memref<1x120xf32, #tpu.memory_space<vmem>>, %arg8: memref<120x84xf32, #tpu.memory_space<vmem>>, %arg9: memref<1x84xf32, #tpu.memory_space<vmem>>, %arg10: memref<84x10xf32, #tpu.memory_space<vmem>>, %arg11: memref<1x10xf32, #tpu.memory_space<vmem>>, %arg12: memref<2x10xf32, #tpu.memory_space<vmem>>, %arg13: memref<2x20x48xf32, #tpu.memory_space<vmem>>, %arg14: memref<32x96xf32, #tpu.memory_space<vmem>>, %arg15: memref<2x12x95xf32, #tpu.memory_space<vmem>>, %arg16: memref<16x128xf32, #tpu.memory_space<vmem>>, %arg17: memref<8x127xf32, #tpu.memory_space<vmem>>) attributes {dimension_semantics = [#tpu.dimension_semantics<parallel>], iteration_bounds = array<i64: 1>, scalar_prefetch = 0 : i64, scratch_operands = 5 : i64, tpu.core_type = #tpu.core_type<tc>, window_params = [{transform_indices = @transform_0, window_bounds = array<i64: 2, 16, 48>}, {pipeline_mode = #tpu.pipeline_mode<synchronous>, transform_indices = @transform_1, window_bounds = array<i64: 5, 48, 96>}, {pipeline_mode = #tpu.pipeline_mode<synchronous>, transform_indices = @transform_2, window_bounds = array<i64: 1, 96>}, {pipeline_mode = #tpu.pipeline_mode<synchronous>, transform_indices = @transform_3, window_bounds = array<i64: 5, 95, 128>}, {pipeline_mode = #tpu.pipeline_mode<synchronous>, transform_indices = @transform_4, window_bounds = array<i64: 1, 128>}, {pipeline_mode = #tpu.pipeline_mode<synchronous>, transform_indices = @transform_5, window_bounds = array<i64: 4, 127, 120>}, {pipeline_mode = #tpu.pipeline_mode<synchronous>, transform_indices = @transform_6, window_bounds = array<i64: 1, 120>}, {pipeline_mode = #tpu.pipeline_mode<synchronous>, transform_indices = @transform_7, window_bounds = array<i64: 120, 84>}, {pipeline_mode = #tpu.pipeline_mode<synchronous>, transform_indices = @transform_8, window_bounds = array<i64: 1, 84>}, {pipeline_mode = #tpu.pipeline_mode<synchronous>, transform_indices = @transform_9, window_bounds = array<i64: 84, 10>}, {pipeline_mode = #tpu.pipeline_mode<synchronous>, transform_indices = @transform_10, window_bounds = array<i64: 1, 10>}, {transform_indices = @transform_11, window_bounds = array<i64: 2, 10>}]} {
    %cst = arith.constant 0.000000e+00 : f32
    %0 = vector.broadcast %cst : f32 to vector<2x2x48xf32>
    %c0 = arith.constant 0 : index
    %c0_0 = arith.constant 0 : index
    %c0_1 = arith.constant 0 : index
    %1 = vector.load %arg13[%c0, %c0_0, %c0_1] : memref<2x20x48xf32, #tpu.memory_space<vmem>>, vector<2x2x48xf32>
    tpu.vector_store %arg13[%c0, %c0_0, %c0_1], %0 {strides = array<i32>} : memref<2x20x48xf32, #tpu.memory_space<vmem>>, vector<2x2x48xf32>,
    %cst_2 = arith.constant 0.000000e+00 : f32
    %2 = vector.broadcast %cst_2 : f32 to vector<2x2x48xf32>
    %c0_3 = arith.constant 0 : index
    %c18 = arith.constant 18 : index
    %c0_4 = arith.constant 0 : index
    %3 = vector.load %arg13[%c0_3, %c18, %c0_4] : memref<2x20x48xf32, #tpu.memory_space<vmem>>, vector<2x2x48xf32>
    tpu.vector_store %arg13[%c0_3, %c18, %c0_4], %2 {strides = array<i32>} : memref<2x20x48xf32, #tpu.memory_space<vmem>>, vector<2x2x48xf32>,
    %c0_5 = arith.constant 0 : index
    %c0_6 = arith.constant 0 : index
    %c0_7 = arith.constant 0 : index
    %4 = vector.load %arg1[%c0_5, %c0_6, %c0_7] : memref<2x16x48xf32, #tpu.memory_space<vmem>>, vector<2x16x48xf32>
    %c0_8 = arith.constant 0 : index
    %c2 = arith.constant 2 : index
    %c0_9 = arith.constant 0 : index
    %5 = vector.load %arg13[%c0_8, %c2, %c0_9] : memref<2x20x48xf32, #tpu.memory_space<vmem>>, vector<2x16x48xf32>
    tpu.vector_store %arg13[%c0_8, %c2, %c0_9], %4 {strides = array<i32>} : memref<2x20x48xf32, #tpu.memory_space<vmem>>, vector<2x16x48xf32>,
    %c0_10 = arith.constant 0 : index
    %c0_11 = arith.constant 0 : index
    %c0_12 = arith.constant 0 : index
    %6 = vector.load %arg13[%c0_10, %c0_11, %c0_12] : memref<2x20x48xf32, #tpu.memory_space<vmem>>, vector<2x16x48xf32>
    %7 = vector.shape_cast %6 : vector<2x16x48xf32> to vector<32x48xf32>
    %c0_13 = arith.constant 0 : index
    %c0_14 = arith.constant 0 : index
    %c0_15 = arith.constant 0 : index
    %8 = vector.load %arg2[%c0_13, %c0_14, %c0_15] : memref<5x48x96xf32, #tpu.memory_space<vmem>>, vector<1x48x96xf32>
    %9 = vector.shape_cast %8 : vector<1x48x96xf32> to vector<48x96xf32>
    %cst_16 = arith.constant dense<0.000000e+00> : vector<32x96xf32>
    %10 = tpu.matmul %7, %9, %cst_16 {dimension_numbers = #tpu.dot_dimension_numbers<[1], [0], [0], [1], [0, 0, 1, 1], [], []>} : vector<32x48xf32>, vector<48x96xf32>, vector<32x96xf32> -> vector<32x96xf32>
    %c0_17 = arith.constant 0 : index
    %c1 = arith.constant 1 : index
    %c0_18 = arith.constant 0 : index
    %11 = vector.load %arg13[%c0_17, %c1, %c0_18] : memref<2x20x48xf32, #tpu.memory_space<vmem>>, vector<2x16x48xf32>
    %12 = vector.shape_cast %11 : vector<2x16x48xf32> to vector<32x48xf32>
    %c1_19 = arith.constant 1 : index
    %c0_20 = arith.constant 0 : index
    %c0_21 = arith.constant 0 : index
    %13 = vector.load %arg2[%c1_19, %c0_20, %c0_21] : memref<5x48x96xf32, #tpu.memory_space<vmem>>, vector<1x48x96xf32>
    %14 = vector.shape_cast %13 : vector<1x48x96xf32> to vector<48x96xf32>
    %cst_22 = arith.constant dense<0.000000e+00> : vector<32x96xf32>
    %15 = tpu.matmul %12, %14, %cst_22 {dimension_numbers = #tpu.dot_dimension_numbers<[1], [0], [0], [1], [0, 0, 1, 1], [], []>} : vector<32x48xf32>, vector<48x96xf32>, vector<32x96xf32> -> vector<32x96xf32>
    %16 = arith.addf %10, %15 : vector<32x96xf32>
    %c0_23 = arith.constant 0 : index
    %c2_24 = arith.constant 2 : index
    %c0_25 = arith.constant 0 : index
    %17 = vector.load %arg13[%c0_23, %c2_24, %c0_25] : memref<2x20x48xf32, #tpu.memory_space<vmem>>, vector<2x16x48xf32>
    %18 = vector.shape_cast %17 : vector<2x16x48xf32> to vector<32x48xf32>
    %c2_26 = arith.constant 2 : index
    %c0_27 = arith.constant 0 : index
    %c0_28 = arith.constant 0 : index
    %19 = vector.load %arg2[%c2_26, %c0_27, %c0_28] : memref<5x48x96xf32, #tpu.memory_space<vmem>>, vector<1x48x96xf32>
    %20 = vector.shape_cast %19 : vector<1x48x96xf32> to vector<48x96xf32>
    %cst_29 = arith.constant dense<0.000000e+00> : vector<32x96xf32>
    %21 = tpu.matmul %18, %20, %cst_29 {dimension_numbers = #tpu.dot_dimension_numbers<[1], [0], [0], [1], [0, 0, 1, 1], [], []>} : vector<32x48xf32>, vector<48x96xf32>, vector<32x96xf32> -> vector<32x96xf32>
    %22 = arith.addf %16, %21 : vector<32x96xf32>
    %c0_30 = arith.constant 0 : index
    %c3 = arith.constant 3 : index
    %c0_31 = arith.constant 0 : index
    %23 = vector.load %arg13[%c0_30, %c3, %c0_31] : memref<2x20x48xf32, #tpu.memory_space<vmem>>, vector<2x16x48xf32>
    %24 = vector.shape_cast %23 : vector<2x16x48xf32> to vector<32x48xf32>
    %c3_32 = arith.constant 3 : index
    %c0_33 = arith.constant 0 : index
    %c0_34 = arith.constant 0 : index
    %25 = vector.load %arg2[%c3_32, %c0_33, %c0_34] : memref<5x48x96xf32, #tpu.memory_space<vmem>>, vector<1x48x96xf32>
    %26 = vector.shape_cast %25 : vector<1x48x96xf32> to vector<48x96xf32>
    %cst_35 = arith.constant dense<0.000000e+00> : vector<32x96xf32>
    %27 = tpu.matmul %24, %26, %cst_35 {dimension_numbers = #tpu.dot_dimension_numbers<[1], [0], [0], [1], [0, 0, 1, 1], [], []>} : vector<32x48xf32>, vector<48x96xf32>, vector<32x96xf32> -> vector<32x96xf32>
    %28 = arith.addf %22, %27 : vector<32x96xf32>
    %c0_36 = arith.constant 0 : index
    %c4 = arith.constant 4 : index
    %c0_37 = arith.constant 0 : index
    %29 = vector.load %arg13[%c0_36, %c4, %c0_37] : memref<2x20x48xf32, #tpu.memory_space<vmem>>, vector<2x16x48xf32>
    %30 = vector.shape_cast %29 : vector<2x16x48xf32> to vector<32x48xf32>
    %c4_38 = arith.constant 4 : index
    %c0_39 = arith.constant 0 : index
    %c0_40 = arith.constant 0 : index
    %31 = vector.load %arg2[%c4_38, %c0_39, %c0_40] : memref<5x48x96xf32, #tpu.memory_space<vmem>>, vector<1x48x96xf32>
    %32 = vector.shape_cast %31 : vector<1x48x96xf32> to vector<48x96xf32>
    %cst_41 = arith.constant dense<0.000000e+00> : vector<32x96xf32>
    %33 = tpu.matmul %30, %32, %cst_41 {dimension_numbers = #tpu.dot_dimension_numbers<[1], [0], [0], [1], [0, 0, 1, 1], [], []>} : vector<32x48xf32>, vector<48x96xf32>, vector<32x96xf32> -> vector<32x96xf32>
    %34 = arith.addf %28, %33 : vector<32x96xf32>
    %c0_42 = arith.constant 0 : index
    %c0_43 = arith.constant 0 : index
    %35 = vector.load %arg3[%c0_42, %c0_43] : memref<1x96xf32, #tpu.memory_space<vmem>>, vector<1x96xf32>
    %36 = vector.broadcast %35 : vector<1x96xf32> to vector<32x96xf32>
    %37 = arith.addf %34, %36 : vector<32x96xf32>
    %cst_44 = arith.constant 0.000000e+00 : f32
    %38 = vector.broadcast %cst_44 : f32 to vector<32x96xf32>
    %39 = arith.maximumf %37, %38 : vector<32x96xf32>
    %c0_45 = arith.constant 0 : index
    %c0_46 = arith.constant 0 : index
    %40 = vector.load %arg14[%c0_45, %c0_46] : memref<32x96xf32, #tpu.memory_space<vmem>>, vector<32x96xf32>
    tpu.vector_store %arg14[%c0_45, %c0_46], %39 {strides = array<i32>} : memref<32x96xf32, #tpu.memory_space<vmem>>, vector<32x96xf32>,
    %c0_47 = arith.constant 0 : index
    %c0_48 = arith.constant 0 : index
    %41 = tpu.strided_load %arg14[%c0_47, %c0_48] {strides = array<i32: 2, 1>} : memref<32x96xf32, #tpu.memory_space<vmem>>, vector<16x96xf32>
    %c1_49 = arith.constant 1 : index
    %c0_50 = arith.constant 0 : index
    %42 = tpu.strided_load %arg14[%c1_49, %c0_50] {strides = array<i32: 2, 1>} : memref<32x96xf32, #tpu.memory_space<vmem>>, vector<16x96xf32>
    %43 = arith.maximumf %41, %42 : vector<16x96xf32>
    %44 = vector.extract_strided_slice %43 {offsets = [0, 0], sizes = [16, 95], strides = [1, 1]} : vector<16x96xf32> to vector<16x95xf32>
    %45 = vector.extract_strided_slice %43 {offsets = [0, 1], sizes = [16, 95], strides = [1, 1]} : vector<16x96xf32> to vector<16x95xf32>
    %46 = arith.maximumf %44, %45 : vector<16x95xf32>
    %cst_51 = arith.constant 0.000000e+00 : f32
    %47 = vector.broadcast %cst_51 : f32 to vector<2x2x95xf32>
    %c0_52 = arith.constant 0 : index
    %c0_53 = arith.constant 0 : index
    %c0_54 = arith.constant 0 : index
    %48 = vector.load %arg15[%c0_52, %c0_53, %c0_54] : memref<2x12x95xf32, #tpu.memory_space<vmem>>, vector<2x2x95xf32>
    tpu.vector_store %arg15[%c0_52, %c0_53, %c0_54], %47 {strides = array<i32>} : memref<2x12x95xf32, #tpu.memory_space<vmem>>, vector<2x2x95xf32>,
    %cst_55 = arith.constant 0.000000e+00 : f32
    %49 = vector.broadcast %cst_55 : f32 to vector<2x2x95xf32>
    %c0_56 = arith.constant 0 : index
    %c10 = arith.constant 10 : index
    %c0_57 = arith.constant 0 : index
    %50 = vector.load %arg15[%c0_56, %c10, %c0_57] : memref<2x12x95xf32, #tpu.memory_space<vmem>>, vector<2x2x95xf32>
    tpu.vector_store %arg15[%c0_56, %c10, %c0_57], %49 {strides = array<i32>} : memref<2x12x95xf32, #tpu.memory_space<vmem>>, vector<2x2x95xf32>,
    %51 = vector.shape_cast %46 : vector<16x95xf32> to vector<2x8x95xf32>
    %c0_58 = arith.constant 0 : index
    %c2_59 = arith.constant 2 : index
    %c0_60 = arith.constant 0 : index
    %52 = vector.load %arg15[%c0_58, %c2_59, %c0_60] : memref<2x12x95xf32, #tpu.memory_space<vmem>>, vector<2x8x95xf32>
    tpu.vector_store %arg15[%c0_58, %c2_59, %c0_60], %51 {strides = array<i32>} : memref<2x12x95xf32, #tpu.memory_space<vmem>>, vector<2x8x95xf32>,
    %c0_61 = arith.constant 0 : index
    %c0_62 = arith.constant 0 : index
    %c0_63 = arith.constant 0 : index
    %53 = vector.load %arg15[%c0_61, %c0_62, %c0_63] : memref<2x12x95xf32, #tpu.memory_space<vmem>>, vector<2x8x95xf32>
    %54 = vector.shape_cast %53 : vector<2x8x95xf32> to vector<16x95xf32>
    %c0_64 = arith.constant 0 : index
    %c0_65 = arith.constant 0 : index
    %c0_66 = arith.constant 0 : index
    %55 = vector.load %arg4[%c0_64, %c0_65, %c0_66] : memref<5x95x128xf32, #tpu.memory_space<vmem>>, vector<1x95x128xf32>
    %56 = vector.shape_cast %55 : vector<1x95x128xf32> to vector<95x128xf32>
    %cst_67 = arith.constant dense<0.000000e+00> : vector<16x128xf32>
    %57 = tpu.matmul %54, %56, %cst_67 {dimension_numbers = #tpu.dot_dimension_numbers<[1], [0], [0], [1], [0, 0, 1, 1], [], []>} : vector<16x95xf32>, vector<95x128xf32>, vector<16x128xf32> -> vector<16x128xf32>
    %c0_68 = arith.constant 0 : index
    %c1_69 = arith.constant 1 : index
    %c0_70 = arith.constant 0 : index
    %58 = vector.load %arg15[%c0_68, %c1_69, %c0_70] : memref<2x12x95xf32, #tpu.memory_space<vmem>>, vector<2x8x95xf32>
    %59 = vector.shape_cast %58 : vector<2x8x95xf32> to vector<16x95xf32>
    %c1_71 = arith.constant 1 : index
    %c0_72 = arith.constant 0 : index
    %c0_73 = arith.constant 0 : index
    %60 = vector.load %arg4[%c1_71, %c0_72, %c0_73] : memref<5x95x128xf32, #tpu.memory_space<vmem>>, vector<1x95x128xf32>
    %61 = vector.shape_cast %60 : vector<1x95x128xf32> to vector<95x128xf32>
    %cst_74 = arith.constant dense<0.000000e+00> : vector<16x128xf32>
    %62 = tpu.matmul %59, %61, %cst_74 {dimension_numbers = #tpu.dot_dimension_numbers<[1], [0], [0], [1], [0, 0, 1, 1], [], []>} : vector<16x95xf32>, vector<95x128xf32>, vector<16x128xf32> -> vector<16x128xf32>
    %63 = arith.addf %57, %62 : vector<16x128xf32>
    %c0_75 = arith.constant 0 : index
    %c2_76 = arith.constant 2 : index
    %c0_77 = arith.constant 0 : index
    %64 = vector.load %arg15[%c0_75, %c2_76, %c0_77] : memref<2x12x95xf32, #tpu.memory_space<vmem>>, vector<2x8x95xf32>
    %65 = vector.shape_cast %64 : vector<2x8x95xf32> to vector<16x95xf32>
    %c2_78 = arith.constant 2 : index
    %c0_79 = arith.constant 0 : index
    %c0_80 = arith.constant 0 : index
    %66 = vector.load %arg4[%c2_78, %c0_79, %c0_80] : memref<5x95x128xf32, #tpu.memory_space<vmem>>, vector<1x95x128xf32>
    %67 = vector.shape_cast %66 : vector<1x95x128xf32> to vector<95x128xf32>
    %cst_81 = arith.constant dense<0.000000e+00> : vector<16x128xf32>
    %68 = tpu.matmul %65, %67, %cst_81 {dimension_numbers = #tpu.dot_dimension_numbers<[1], [0], [0], [1], [0, 0, 1, 1], [], []>} : vector<16x95xf32>, vector<95x128xf32>, vector<16x128xf32> -> vector<16x128xf32>
    %69 = arith.addf %63, %68 : vector<16x128xf32>
    %c0_82 = arith.constant 0 : index
    %c3_83 = arith.constant 3 : index
    %c0_84 = arith.constant 0 : index
    %70 = vector.load %arg15[%c0_82, %c3_83, %c0_84] : memref<2x12x95xf32, #tpu.memory_space<vmem>>, vector<2x8x95xf32>
    %71 = vector.shape_cast %70 : vector<2x8x95xf32> to vector<16x95xf32>
    %c3_85 = arith.constant 3 : index
    %c0_86 = arith.constant 0 : index
    %c0_87 = arith.constant 0 : index
    %72 = vector.load %arg4[%c3_85, %c0_86, %c0_87] : memref<5x95x128xf32, #tpu.memory_space<vmem>>, vector<1x95x128xf32>
    %73 = vector.shape_cast %72 : vector<1x95x128xf32> to vector<95x128xf32>
    %cst_88 = arith.constant dense<0.000000e+00> : vector<16x128xf32>
    %74 = tpu.matmul %71, %73, %cst_88 {dimension_numbers = #tpu.dot_dimension_numbers<[1], [0], [0], [1], [0, 0, 1, 1], [], []>} : vector<16x95xf32>, vector<95x128xf32>, vector<16x128xf32> -> vector<16x128xf32>
    %75 = arith.addf %69, %74 : vector<16x128xf32>
    %c0_89 = arith.constant 0 : index
    %c4_90 = arith.constant 4 : index
    %c0_91 = arith.constant 0 : index
    %76 = vector.load %arg15[%c0_89, %c4_90, %c0_91] : memref<2x12x95xf32, #tpu.memory_space<vmem>>, vector<2x8x95xf32>
    %77 = vector.shape_cast %76 : vector<2x8x95xf32> to vector<16x95xf32>
    %c4_92 = arith.constant 4 : index
    %c0_93 = arith.constant 0 : index
    %c0_94 = arith.constant 0 : index
    %78 = vector.load %arg4[%c4_92, %c0_93, %c0_94] : memref<5x95x128xf32, #tpu.memory_space<vmem>>, vector<1x95x128xf32>
    %79 = vector.shape_cast %78 : vector<1x95x128xf32> to vector<95x128xf32>
    %cst_95 = arith.constant dense<0.000000e+00> : vector<16x128xf32>
    %80 = tpu.matmul %77, %79, %cst_95 {dimension_numbers = #tpu.dot_dimension_numbers<[1], [0], [0], [1], [0, 0, 1, 1], [], []>} : vector<16x95xf32>, vector<95x128xf32>, vector<16x128xf32> -> vector<16x128xf32>
    %81 = arith.addf %75, %80 : vector<16x128xf32>
    %c0_96 = arith.constant 0 : index
    %c0_97 = arith.constant 0 : index
    %82 = vector.load %arg5[%c0_96, %c0_97] : memref<1x128xf32, #tpu.memory_space<vmem>>, vector<1x128xf32>
    %83 = vector.broadcast %82 : vector<1x128xf32> to vector<16x128xf32>
    %84 = arith.addf %81, %83 : vector<16x128xf32>
    %cst_98 = arith.constant 0.000000e+00 : f32
    %85 = vector.broadcast %cst_98 : f32 to vector<16x128xf32>
    %86 = arith.maximumf %84, %85 : vector<16x128xf32>
    %c0_99 = arith.constant 0 : index
    %c0_100 = arith.constant 0 : index
    %87 = vector.load %arg16[%c0_99, %c0_100] : memref<16x128xf32, #tpu.memory_space<vmem>>, vector<16x128xf32>
    tpu.vector_store %arg16[%c0_99, %c0_100], %86 {strides = array<i32>} : memref<16x128xf32, #tpu.memory_space<vmem>>, vector<16x128xf32>,
    %c0_101 = arith.constant 0 : index
    %c0_102 = arith.constant 0 : index
    %88 = tpu.strided_load %arg16[%c0_101, %c0_102] {strides = array<i32: 2, 1>} : memref<16x128xf32, #tpu.memory_space<vmem>>, vector<8x128xf32>
    %c1_103 = arith.constant 1 : index
    %c0_104 = arith.constant 0 : index
    %89 = tpu.strided_load %arg16[%c1_103, %c0_104] {strides = array<i32: 2, 1>} : memref<16x128xf32, #tpu.memory_space<vmem>>, vector<8x128xf32>
    %90 = arith.maximumf %88, %89 : vector<8x128xf32>
    %91 = vector.extract_strided_slice %90 {offsets = [0, 0], sizes = [8, 127], strides = [1, 1]} : vector<8x128xf32> to vector<8x127xf32>
    %92 = vector.extract_strided_slice %90 {offsets = [0, 1], sizes = [8, 127], strides = [1, 1]} : vector<8x128xf32> to vector<8x127xf32>
    %93 = arith.maximumf %91, %92 : vector<8x127xf32>
    %c0_105 = arith.constant 0 : index
    %c0_106 = arith.constant 0 : index
    %94 = vector.load %arg17[%c0_105, %c0_106] : memref<8x127xf32, #tpu.memory_space<vmem>>, vector<8x127xf32>
    tpu.vector_store %arg17[%c0_105, %c0_106], %93 {strides = array<i32>} : memref<8x127xf32, #tpu.memory_space<vmem>>, vector<8x127xf32>,
    %c0_107 = arith.constant 0 : index
    %c0_108 = arith.constant 0 : index
    %95 = tpu.strided_load %arg17[%c0_107, %c0_108] {strides = array<i32: 4, 1>} : memref<8x127xf32, #tpu.memory_space<vmem>>, vector<2x127xf32>
    %c0_109 = arith.constant 0 : index
    %c0_110 = arith.constant 0 : index
    %c0_111 = arith.constant 0 : index
    %96 = vector.load %arg6[%c0_109, %c0_110, %c0_111] : memref<4x127x120xf32, #tpu.memory_space<vmem>>, vector<1x127x120xf32>
    %97 = vector.shape_cast %96 : vector<1x127x120xf32> to vector<127x120xf32>
    %cst_112 = arith.constant dense<0.000000e+00> : vector<2x120xf32>
    %98 = tpu.matmul %95, %97, %cst_112 {dimension_numbers = #tpu.dot_dimension_numbers<[1], [0], [0], [1], [0, 0, 1, 1], [], []>} : vector<2x127xf32>, vector<127x120xf32>, vector<2x120xf32> -> vector<2x120xf32>
    %c1_113 = arith.constant 1 : index
    %c0_114 = arith.constant 0 : index
    %99 = tpu.strided_load %arg17[%c1_113, %c0_114] {strides = array<i32: 4, 1>} : memref<8x127xf32, #tpu.memory_space<vmem>>, vector<2x127xf32>
    %c1_115 = arith.constant 1 : index
    %c0_116 = arith.constant 0 : index
    %c0_117 = arith.constant 0 : index
    %100 = vector.load %arg6[%c1_115, %c0_116, %c0_117] : memref<4x127x120xf32, #tpu.memory_space<vmem>>, vector<1x127x120xf32>
    %101 = vector.shape_cast %100 : vector<1x127x120xf32> to vector<127x120xf32>
    %cst_118 = arith.constant dense<0.000000e+00> : vector<2x120xf32>
    %102 = tpu.matmul %99, %101, %cst_118 {dimension_numbers = #tpu.dot_dimension_numbers<[1], [0], [0], [1], [0, 0, 1, 1], [], []>} : vector<2x127xf32>, vector<127x120xf32>, vector<2x120xf32> -> vector<2x120xf32>
    %103 = arith.addf %98, %102 : vector<2x120xf32>
    %c2_119 = arith.constant 2 : index
    %c0_120 = arith.constant 0 : index
    %104 = tpu.strided_load %arg17[%c2_119, %c0_120] {strides = array<i32: 4, 1>} : memref<8x127xf32, #tpu.memory_space<vmem>>, vector<2x127xf32>
    %c2_121 = arith.constant 2 : index
    %c0_122 = arith.constant 0 : index
    %c0_123 = arith.constant 0 : index
    %105 = vector.load %arg6[%c2_121, %c0_122, %c0_123] : memref<4x127x120xf32, #tpu.memory_space<vmem>>, vector<1x127x120xf32>
    %106 = vector.shape_cast %105 : vector<1x127x120xf32> to vector<127x120xf32>
    %cst_124 = arith.constant dense<0.000000e+00> : vector<2x120xf32>
    %107 = tpu.matmul %104, %106, %cst_124 {dimension_numbers = #tpu.dot_dimension_numbers<[1], [0], [0], [1], [0, 0, 1, 1], [], []>} : vector<2x127xf32>, vector<127x120xf32>, vector<2x120xf32> -> vector<2x120xf32>
    %108 = arith.addf %103, %107 : vector<2x120xf32>
    %c3_125 = arith.constant 3 : index
    %c0_126 = arith.constant 0 : index
    %109 = tpu.strided_load %arg17[%c3_125, %c0_126] {strides = array<i32: 4, 1>} : memref<8x127xf32, #tpu.memory_space<vmem>>, vector<2x127xf32>
    %c3_127 = arith.constant 3 : index
    %c0_128 = arith.constant 0 : index
    %c0_129 = arith.constant 0 : index
    %110 = vector.load %arg6[%c3_127, %c0_128, %c0_129] : memref<4x127x120xf32, #tpu.memory_space<vmem>>, vector<1x127x120xf32>
    %111 = vector.shape_cast %110 : vector<1x127x120xf32> to vector<127x120xf32>
    %cst_130 = arith.constant dense<0.000000e+00> : vector<2x120xf32>
    %112 = tpu.matmul %109, %111, %cst_130 {dimension_numbers = #tpu.dot_dimension_numbers<[1], [0], [0], [1], [0, 0, 1, 1], [], []>} : vector<2x127xf32>, vector<127x120xf32>, vector<2x120xf32> -> vector<2x120xf32>
    %113 = arith.addf %108, %112 : vector<2x120xf32>
    %c0_131 = arith.constant 0 : index
    %c0_132 = arith.constant 0 : index
    %114 = vector.load %arg7[%c0_131, %c0_132] : memref<1x120xf32, #tpu.memory_space<vmem>>, vector<1x120xf32>
    %115 = vector.broadcast %114 : vector<1x120xf32> to vector<2x120xf32>
    %116 = arith.addf %113, %115 : vector<2x120xf32>
    %cst_133 = arith.constant 0.000000e+00 : f32
    %117 = vector.broadcast %cst_133 : f32 to vector<2x120xf32>
    %118 = arith.maximumf %116, %117 : vector<2x120xf32>
    %c0_134 = arith.constant 0 : index
    %c0_135 = arith.constant 0 : index
    %119 = vector.load %arg8[%c0_134, %c0_135] : memref<120x84xf32, #tpu.memory_space<vmem>>, vector<120x84xf32>
    %cst_136 = arith.constant dense<0.000000e+00> : vector<2x84xf32>
    %120 = tpu.matmul %118, %119, %cst_136 {dimension_numbers = #tpu.dot_dimension_numbers<[1], [0], [0], [1], [0, 0, 1, 1], [], []>} : vector<2x120xf32>, vector<120x84xf32>, vector<2x84xf32> -> vector<2x84xf32>
    %c0_137 = arith.constant 0 : index
    %c0_138 = arith.constant 0 : index
    %121 = vector.load %arg9[%c0_137, %c0_138] : memref<1x84xf32, #tpu.memory_space<vmem>>, vector<1x84xf32>
    %122 = vector.broadcast %121 : vector<1x84xf32> to vector<2x84xf32>
    %123 = arith.addf %120, %122 : vector<2x84xf32>
    %cst_139 = arith.constant 0.000000e+00 : f32
    %124 = vector.broadcast %cst_139 : f32 to vector<2x84xf32>
    %125 = arith.maximumf %123, %124 : vector<2x84xf32>
    %c0_140 = arith.constant 0 : index
    %c0_141 = arith.constant 0 : index
    %126 = vector.load %arg10[%c0_140, %c0_141] : memref<84x10xf32, #tpu.memory_space<vmem>>, vector<84x10xf32>
    %cst_142 = arith.constant dense<0.000000e+00> : vector<2x10xf32>
    %127 = tpu.matmul %125, %126, %cst_142 {dimension_numbers = #tpu.dot_dimension_numbers<[1], [0], [0], [1], [0, 0, 1, 1], [], []>} : vector<2x84xf32>, vector<84x10xf32>, vector<2x10xf32> -> vector<2x10xf32>
    %c0_143 = arith.constant 0 : index
    %c0_144 = arith.constant 0 : index
    %128 = vector.load %arg11[%c0_143, %c0_144] : memref<1x10xf32, #tpu.memory_space<vmem>>, vector<1x10xf32>
    %129 = vector.broadcast %128 : vector<1x10xf32> to vector<2x10xf32>
    %130 = arith.addf %127, %129 : vector<2x10xf32>
    %131 = math.tanh %130 : vector<2x10xf32>
    %c0_145 = arith.constant 0 : index
    %c0_146 = arith.constant 0 : index
    %132 = vector.load %arg12[%c0_145, %c0_146] : memref<2x10xf32, #tpu.memory_space<vmem>>, vector<2x10xf32>
    tpu.vector_store %arg12[%c0_145, %c0_146], %131 {strides = array<i32>} : memref<2x10xf32, #tpu.memory_space<vmem>>, vector<2x10xf32>,
    return
  }
  func.func @transform_0(%arg0: i32) -> (i32, i32, i32) {
    %c0_i32 = arith.constant 0 : i32
    %c0_i32_0 = arith.constant 0 : i32
    %c0_i32_1 = arith.constant 0 : i32
    return %arg0, %c0_i32, %c0_i32_0 : i32, i32, i32
  }
  func.func @transform_1(%arg0: i32) -> (i32, i32, i32) {
    %c0_i32 = arith.constant 0 : i32
    %c0_i32_0 = arith.constant 0 : i32
    %c0_i32_1 = arith.constant 0 : i32
    %c0_i32_2 = arith.constant 0 : i32
    return %c0_i32, %c0_i32_0, %c0_i32_1 : i32, i32, i32
  }
  func.func @transform_2(%arg0: i32) -> (i32, i32) {
    %c0_i32 = arith.constant 0 : i32
    %c0_i32_0 = arith.constant 0 : i32
    %c0_i32_1 = arith.constant 0 : i32
    return %c0_i32, %c0_i32_0 : i32, i32
  }
  func.func @transform_3(%arg0: i32) -> (i32, i32, i32) {
    %c0_i32 = arith.constant 0 : i32
    %c0_i32_0 = arith.constant 0 : i32
    %c0_i32_1 = arith.constant 0 : i32
    %c0_i32_2 = arith.constant 0 : i32
    return %c0_i32, %c0_i32_0, %c0_i32_1 : i32, i32, i32
  }
  func.func @transform_4(%arg0: i32) -> (i32, i32) {
    %c0_i32 = arith.constant 0 : i32
    %c0_i32_0 = arith.constant 0 : i32
    %c0_i32_1 = arith.constant 0 : i32
    return %c0_i32, %c0_i32_0 : i32, i32
  }
  func.func @transform_5(%arg0: i32) -> (i32, i32, i32) {
    %c0_i32 = arith.constant 0 : i32
    %c0_i32_0 = arith.constant 0 : i32
    %c0_i32_1 = arith.constant 0 : i32
    %c0_i32_2 = arith.constant 0 : i32
    return %c0_i32, %c0_i32_0, %c0_i32_1 : i32, i32, i32
  }
  func.func @transform_6(%arg0: i32) -> (i32, i32) {
    %c0_i32 = arith.constant 0 : i32
    %c0_i32_0 = arith.constant 0 : i32
    %c0_i32_1 = arith.constant 0 : i32
    return %c0_i32, %c0_i32_0 : i32, i32
  }
  func.func @transform_7(%arg0: i32) -> (i32, i32) {
    %c0_i32 = arith.constant 0 : i32
    %c0_i32_0 = arith.constant 0 : i32
    %c0_i32_1 = arith.constant 0 : i32
    return %c0_i32, %c0_i32_0 : i32, i32
  }
  func.func @transform_8(%arg0: i32) -> (i32, i32) {
    %c0_i32 = arith.constant 0 : i32
    %c0_i32_0 = arith.constant 0 : i32
    %c0_i32_1 = arith.constant 0 : i32
    return %c0_i32, %c0_i32_0 : i32, i32
  }
  func.func @transform_9(%arg0: i32) -> (i32, i32) {
    %c0_i32 = arith.constant 0 : i32
    %c0_i32_0 = arith.constant 0 : i32
    %c0_i32_1 = arith.constant 0 : i32
    return %c0_i32, %c0_i32_0 : i32, i32
  }
  func.func @transform_10(%arg0: i32) -> (i32, i32) {
    %c0_i32 = arith.constant 0 : i32
    %c0_i32_0 = arith.constant 0 : i32
    %c0_i32_1 = arith.constant 0 : i32
    return %c0_i32, %c0_i32_0 : i32, i32
  }
  func.func @transform_11(%arg0: i32) -> (i32, i32) {
    %c0_i32 = arith.constant 0 : i32
    %c0_i32_0 = arith.constant 0 : i32
    return %arg0, %c0_i32 : i32, i32
  }
}

</mosaic_0001>

<bundles_post_ra>
// kernel: network_forward.1
= control target key start
LH: loop header
LB: loop body
LE: loop exit
PB: predicated region body
PF: predicated region fallthrough
CT: control target
= control target key end

     0   :  { %vm39_vm0 = vcmask 386048   ;;  %vm48_vm1 = vcmask 392192   ;;  %v2967_v5 = vmov 0.0   ;;  %s3758_s0 = inlined_call_operand.vmem [shape: f32[2,16,48], index: 0, kind: input, shape index: {}]   ;;  %s3759_s1 = inlined_call_operand.vmem [shape: f32[5,48,96], index: 1, kind: input, shape index: {}]   ;;  %s3760_s2 = inlined_call_operand.vmem [shape: f32[1,96], index: 2, kind: input, shape index: {}]   ;;  %s3761_s3 = inlined_call_operand.vmem [shape: f32[5,95,128], index: 3, kind: input, shape index: {}]   ;;  %s3762_s4 = inlined_call_operand.vmem [shape: f32[1,128], index: 4, kind: input, shape index: {}]   ;;  %s3763_s5 = inlined_call_operand.vmem [shape: f32[4,127,120], index: 5, kind: input, shape index: {}]   ;;  %s3764_s6 = inlined_call_operand.vmem [shape: f32[1,120], index: 6, kind: input, shape index: {}]   ;;  %s3765_s7 = inlined_call_operand.vmem [shape: f32[120,84], index: 7, kind: input, shape index: {}]   ;;  %s3766_s8 = inlined_call_operand.vmem [shape: f32[1,84], index: 8, kind: input, shape index: {}]   ;;  %s3767_s9 = inlined_call_operand.vmem [shape: f32[84,10], index: 9, kind: input, shape index: {}]   ;;  %s3768_s10 = inlined_call_operand.vmem [shape: f32[1,10], index: 10, kind: input, shape index: {}]   ;;  %s3769_s11 = inlined_call_operand.hbm [shape: f32[2,10], index: 11, kind: output, shape index: {}]  }
   0x1   :  { %v1775_v0 = vld [vmem:[%s3759_s1 + $0x30] sm:$0xff]  ;;  %v1776_v1 = vld [vmem:[%s3759_s1 + $0x38] sm:$0xff]  ;;  %v1777_v2 = vld [vmem:[%s3759_s1 + $0x40] sm:$0xff]  ;;  %40 = vst.msk [vmem:[#allocation2] sm:$0x3] %vm39_vm0, %v2967_v5 }
   0x2   :  { %v2585_v3 = vpack.c.bf16 %v1776_v1, %v1775_v0  ;;  %v1778_v4 = vld [vmem:[%s3759_s1 + $0x48] sm:$0xff]  ;;  %41 = vst.msk [vmem:[#allocation2 + $0x18] sm:$0x3] %vm39_vm0, %v2967_v5  ;;  %42 = vst.msk [vmem:[#allocation2 + $0x12] sm:$0x3] %vm39_vm0, %v2967_v5  ;;  %v1779_v7 = vld [vmem:[%s3759_s1 + $0x50] sm:$0xff] }
   0x3   :  { %43 = vst.msk [vmem:[#allocation2 + $0x2a] sm:$0x3] %vm39_vm0, %v2967_v5  ;;  %v2589_v6 = vpack.c.bf16 %v1778_v4, %v1777_v2  ;;  %v1780_v8 = vld [vmem:[%s3759_s1 + $0x58] sm:$0xff]  ;;  %v44_v9 = vld [vmem:[%s3758_s0] sm:$0xff]  ;;  %v45_v10 = vld [vmem:[%s3758_s0 + $0x8] sm:$0xff] }
   0x4   :  { %2586 = vmatprep.subr.bf16.mxu0 %v2585_v3  ;;  %49 = vst.msk [vmem:[#allocation2 + $0x2] sm:$0xff] %vm48_vm1, %v44_v9  ;;  %50 = vst.msk [vmem:[#allocation2 + $0xa] sm:$0xff] %vm48_vm1, %v45_v10  ;;  %v46_v11 = vld [vmem:[%s3758_s0 + $0x10] sm:$0xff]  ;;  %v2593_v12 = vpack.c.bf16 %v1780_v8, %v1779_v7  ;;  %v47_v13 = vld [vmem:[%s3758_s0 + $0x18] sm:$0xff] }
   0x5   :  { %2588 = vmatpush3.bf16.msra.mxu0 %v2585_v3  ;;  %51 = vst.msk [vmem:[#allocation2 + $0x1a] sm:$0xff] %vm48_vm1, %v46_v11  ;;  %v57_v14 = vld [vmem:[%s3759_s1] sm:$0xff]  ;;  %v58_v15 = vld [vmem:[%s3759_s1 + $0x8] sm:$0xff]  ;;  %52 = vst.msk [vmem:[#allocation2 + $0x22] sm:$0xff] %vm48_vm1, %v47_v13 }
   0x6   :  { %2590 = vmatprep.subr.bf16.mxu0 %v2589_v6  ;;  %v2597_v16 = vpack.c.bf16 %v58_v15, %v57_v14  ;;  %v59_v18 = vld [vmem:[%s3759_s1 + $0x10] sm:$0xff]  ;;  %v60_v19 = vld [vmem:[%s3759_s1 + $0x18] sm:$0xff]  ;;  %v61_v23 = vld [vmem:[%s3759_s1 + $0x20] sm:$0xff] }
   0x7   :  { %v2601_v21 = vpack.c.bf16 %v60_v19, %v59_v18  ;;  %v62_v24 = vld [vmem:[%s3759_s1 + $0x28] sm:$0xff]  ;;  %v1789_v28 = vld [vmem:[%s3759_s1 + $0x60] sm:$0xff] }
   0x8   :  { %v2605_v26 = vpack.c.bf16 %v62_v24, %v61_v23  ;;  %v1790_v29 = vld [vmem:[%s3759_s1 + $0x68] sm:$0xff] }
   0x9   :  { %2592 = vmatpush3.bf16.msra.mxu0 %v2589_v6 }
   0xa   :  { %2594 = vmatprep.subr.bf16.mxu0 %v2593_v12 }
   0xb   :  { %v63_v17 = vld [vmem:[#allocation2 + $0x1] sm:$0xff]  ;;  %v64_v20 = vld [vmem:[#allocation2 + $0x9] sm:$0xff] }
   0xc   :  { %2174 = vmatprep.mubr.msk.f32.mxu0 %vm48_vm1, %v63_v17  ;;  %v65_v22 = vld [vmem:[#allocation2 + $0x19] sm:$0xff]  ;;  %v66_v25 = vld [vmem:[#allocation2 + $0x21] sm:$0xff] }
   0xd   :  { %2596 = vmatpush3.bf16.msra.mxu0 %v2593_v12  ;;  %v53_v27 = vld [vmem:[#allocation2] sm:$0xff] }
   0xe   :  { %2598 = vmatprep.subr.bf16.mxu0 %v2597_v16 }
  0x10   :  { %2175 = vmatmul.mubr.msk.f32.vlgmr.msra.gmra.mrb[0].mxu0 %vm48_vm1, %v64_v20 }
  0x11   :  { %2600 = vmatpush3.bf16.msra.mxu0 %v2597_v16  ;;  %2177 = vmatprep.mubr.msk.f32.mxu0 %vm48_vm1, %v65_v22 }
  0x12   :  { %2602 = vmatprep.subr.bf16.mxu0 %v2601_v21 }
  0x13   :  { %16 = vsyncpa [#allocation8], 0  ;;  %v2609_v30 = vpack.c.bf16 %v1790_v29, %v1789_v28  ;;  %v1791_v31 = vld [vmem:[%s3759_s1 + $0x70] sm:$0xff]  ;;  %v1792_v32 = vld [vmem:[%s3759_s1 + $0x78] sm:$0xff]  ;;  %vm619_vm2 = vcmask 785408   ;;  %vm643_vm3 = vcmask 771072  }
  0x14   :  { %2178 = vmatmul.mubr.msk.f32.gmra.mrb[2].mxu0 %vm48_vm1, %v66_v25  ;;  %v54_v33 = vld [vmem:[#allocation2 + $0x8] sm:$0xff]  ;;  %v2613_v34 = vpack.c.bf16 %v1792_v32, %v1791_v31  ;;  %v55_v35 = vld [vmem:[#allocation2 + $0x18] sm:$0xff]  ;;  %v1793_v36 = vld [vmem:[%s3759_s1 + $0x80] sm:$0xff]  ;;  %644 = vst.msk [vmem:[#allocation4] sm:$0x3] %vm643_vm3, %v2967_v5  ;;  %vm686_vm4 = vcmask 1046528  }
  0x15   :  { %2604 = vmatpush3.bf16.msra.mxu0 %v2601_v21  ;;  %2192 = vmatprep.mubr.msk.f32.mxu0 %vm48_vm1, %v53_v27  ;;  %v1794_v37 = vld [vmem:[%s3759_s1 + $0x88] sm:$0xff]  ;;  %v56_v38 = vld [vmem:[#allocation2 + $0x20] sm:$0xff]  ;;  %v1799_v41 = vld [vmem:[%s3759_s1 + $0x90] sm:$0xff]  ;;  %645 = vst.msk [vmem:[#allocation4 + $0x10] sm:$0x3] %vm643_vm3, %v2967_v5  ;;  %vm2968_vm5 = vmmov 1  }
  0x16   :  { %2606 = vmatprep.subr.bf16.mxu0 %v2605_v26  ;;  %v2617_v39 = vpack.c.bf16 %v1794_v37, %v1793_v36  ;;  %v268_v40 = vld [vmem:[#allocation2 + $0x2] sm:$0xff]  ;;  %v1800_v42 = vld [vmem:[%s3759_s1 + $0x98] sm:$0xff]  ;;  %v269_v46 = vld [vmem:[#allocation2 + $0xa] sm:$0xff]  ;;  %646 = vst.msk [vmem:[#allocation4 + $0xa] sm:$0x3] %vm643_vm3, %v2967_v5  ;;  %s2969_s13 = smov 127  }
  0x17   :  { %v2621_v43 = vpack.c.bf16 %v1800_v42, %v1799_v41  ;;  %v1801_v44 = vld [vmem:[%s3759_s1 + $0xa0] sm:$0xff]  ;;  %v1802_v45 = vld [vmem:[%s3759_s1 + $0xa8] sm:$0xff]  ;;  %v1803_v49 = vld [vmem:[%s3759_s1 + $0xb0] sm:$0xff]  ;;  %647 = vst.msk [vmem:[#allocation4 + $0x1a] sm:$0x3] %vm643_vm3, %v2967_v5  ;;  %vm648_vm7 = vcmask 777216  }
  0x18   :  { %v2625_v47 = vpack.c.bf16 %v1802_v45, %v1801_v44  ;;  %v270_v48 = vld [vmem:[#allocation2 + $0x1a] sm:$0xff]  ;;  %v271_v51 = vld [vmem:[#allocation2 + $0x22] sm:$0xff]  ;;  %v1811_v57 = vld [vmem:[%s3759_s1 + $0xd0] sm:$0xff]  ;;  %vm2971_vm8 = vmmov 0   ;;  %vm1174_vm9 = vcmask 1039360   ;;  %vm1587_vm10 = vcmask 982016  }
  0x19   :  { %2608 = vmatpush3.bf16.msra.mxu0 %v2605_v26  ;;  %v1804_v50 = vld [vmem:[%s3759_s1 + $0xb8] sm:$0xff]  ;;  %v380_v53 = vld [vmem:[#allocation2 + $0x3] sm:$0xff]  ;;  %v381_v59 = vld [vmem:[#allocation2 + $0xb] sm:$0xff]  ;;  %vm1684_vm11 = vcmask 1043456   ;;  %vm1680_vm12 = vcmask 687104   ;;  %vm1759_vm13 = vcmask 74752  }
  0x1a   :  { %2610 = vmatprep.subr.bf16.mxu0 %v2609_v30  ;;  %v2629_v52 = vpack.c.bf16 %v1804_v50, %v1803_v49  ;;  %v1809_v54 = vld [vmem:[%s3759_s1 + $0xc0] sm:$0xff]  ;;  %v1810_v55 = vld [vmem:[%s3759_s1 + $0xc8] sm:$0xff]  ;;  %v1812_v58 = vld [vmem:[%s3759_s1 + $0xd8] sm:$0xff] }
  0x1b   :  { %v2633_v56 = vpack.c.bf16 %v1810_v55, %v1809_v54  ;;  %v2637_v60 = vpack.c.bf16 %v1812_v58, %v1811_v57  ;;  %v382_v61 = vld [vmem:[#allocation2 + $0x1b] sm:$0xff]  ;;  %v1814_v63 = vld [vmem:[%s3759_s1 + $0xe8] sm:$0xff]  ;;  %v1822_v9 = vld [vmem:[%s3761_s3 + $0x70] sm:$0xff] }
  0x1c   :  { %2193 = vmatmul.mubr.msk.f32.vlgmr.msra.gmra.mrb[0].mxu0 %vm48_vm1, %v54_v33  ;;  %v1813_v62 = vld [vmem:[%s3759_s1 + $0xe0] sm:$0xff]  ;;  %v493_v3 = vld [vmem:[#allocation2 + $0xc] sm:$0xff]  ;;  %v1823_v11 = vld [vmem:[%s3761_s3 + $0x78] sm:$0xff] }
  0x1d   :  { %2612 = vmatpush3.bf16.msra.mxu0 %v2609_v30  ;;  %2195 = vmatprep.mubr.msk.f32.mxu0 %vm48_vm1, %v55_v35  ;;  %v383_v0 = vld [vmem:[#allocation2 + $0x23] sm:$0xff]  ;;  %v2641_v1 = vpack.c.bf16 %v1814_v63, %v1813_v62  ;;  %v2649_v12 = vpack.c.bf16 %v1823_v11, %v1822_v9  ;;  %v1819_v16 = vld [vmem:[%s3760_s2] ss:$0 sm:$0xff]  ;;  %v1826_v20 = vld [vmem:[%s3761_s3 + $0x90] sm:$0xff] }
  0x1e   :  { %2614 = vmatprep.subr.bf16.mxu0 %v2613_v34  ;;  %v492_v2 = vld [vmem:[#allocation2 + $0x4] sm:$0xff]  ;;  %v494_v4 = vld [vmem:[#allocation2 + $0x1c] sm:$0xff]  ;;  %v1830_v35 = vld [vmem:[%s3761_s3 + $0xb0] sm:$0xff] }
  0x1f   :  { %v495_v6 = vld [vmem:[#allocation2 + $0x24] sm:$0xff]  ;;  %v1827_v21 = vld [vmem:[%s3761_s3 + $0x98] sm:$0xff]  ;;  %vm3210_vm6 = vmpackc.low %vm686_vm4, %vm2968_vm5 }
  0x20   :  { %2196 = vmatmul.mubr.msk.f32.gmra.mrb[2].mxu0 %vm48_vm1, %v56_v38  ;;  %v1820_v7 = vld [vmem:[%s3761_s3 + $0x60] sm:$0xff]  ;;  %v1821_v8 = vld [vmem:[%s3761_s3 + $0x68] sm:$0xff]  ;;  %v2657_v23 = vpack.c.bf16 %v1827_v21, %v1826_v20  ;;  %v1831_v36 = vld [vmem:[%s3761_s3 + $0xb8] sm:$0x7f] }
  0x21   :  { %2616 = vmatpush3.bf16.msra.mxu0 %v2613_v34  ;;  %2210 = vmatprep.mubr.msk.f32.mxu0 %vm48_vm1, %v268_v40  ;;  %v2645_v10 = vpack.c.bf16 %v1821_v8, %v1820_v7  ;;  %v1824_v13 = vld [vmem:[%s3761_s3 + $0x80] sm:$0xff]  ;;  %v1825_v14 = vld [vmem:[%s3761_s3 + $0x88] sm:$0xff]  ;;  %v2665_v37 = vpack.c.bf16 %v1831_v36, %v1830_v35  ;;  %v656_v54 = vld [vmem:[%s3761_s3 + $0x18] sm:$0xff] }
  0x22   :  { %2618 = vmatprep.subr.bf16.mxu0 %v2617_v39  ;;  %v2653_v15 = vpack.c.bf16 %v1825_v14, %v1824_v13  ;;  %v1828_v29 = vld [vmem:[%s3761_s3 + $0xa0] sm:$0xff]  ;;  %v1829_v30 = vld [vmem:[%s3761_s3 + $0xa8] sm:$0xff]  ;;  %v660_v62 = vld [vmem:[%s3761_s3 + $0x38] sm:$0xff] }
  0x23   :  { %2646 = vmatprep.subr.bf16.mxu1 %v2645_v10  ;;  %v2661_v32 = vpack.c.bf16 %v1829_v30, %v1828_v29  ;;  %v653_v41 = vld [vmem:[%s3761_s3] sm:$0xff]  ;;  %v658_v58 = vld [vmem:[%s3761_s3 + $0x28] sm:$0xff]  ;;  %v1841_v11 = vld [vmem:[%s3761_s3 + $0xd8] sm:$0xff] }
  0x24   :  { %2648 = vmatpush3.bf16.msra.mxu1 %v2645_v10  ;;  %v657_v57 = vld [vmem:[%s3761_s3 + $0x20] sm:$0xff]  ;;  %v1839_v8 = vld [vmem:[%s3761_s3 + $0xc8] sm:$0xff]  ;;  %v1840_v10 = vld [vmem:[%s3761_s3 + $0xd0] sm:$0xff] }
  0x25   :  { %2620 = vmatpush3.bf16.msra.mxu0 %v2617_v39  ;;  %2650 = vmatprep.subr.bf16.mxu1 %v2649_v12  ;;  %v1838_v7 = vld [vmem:[%s3761_s3 + $0xc0] sm:$0xff]  ;;  %v1855_v30 = vld [vmem:[%s3761_s3 + $0x130] sm:$0xff]  ;;  %v1858_v35 = vld [vmem:[%s3761_s3 + $0x148] sm:$0xff] }
  0x26   :  { %2622 = vmatprep.subr.bf16.mxu0 %v2621_v43  ;;  %v2697_v9 = vpack.c.bf16 %v1839_v8, %v1838_v7  ;;  %v1842_v14 = vld [vmem:[%s3761_s3 + $0xe0] sm:$0xff]  ;;  %v1885_v7 = vld [vmem:[%s3763_s5 + $0x88] sm:$0xff]  ;;  %v1567_v38 = vld [vmem:[%s3765_s7 + $0x10] sm:$0xff] }
  0x27   :  { %v1846_v21 = vld [vmem:[%s3761_s3 + $0x100] sm:$0xff] }
  0x28   :  { %2211 = vmatmul.mubr.msk.f32.vlgmr.msra.gmra.mrb[0].mxu0 %vm48_vm1, %v269_v46  ;;  %2652 = vmatpush3.bf16.msra.mxu1 %v2649_v12  ;;  %v2701_v12 = vpack.c.bf16 %v1841_v11, %v1840_v10  ;;  %v1904_v8 = vld [vmem:[%s3763_s5 + $0x100] sm:$0xff]  ;;  %v1905_v11 = vld [vmem:[%s3763_s5 + $0x108] sm:$0xff] }
  0x29   :  { %2624 = vmatpush3.bf16.msra.mxu0 %v2621_v43  ;;  %2213 = vmatprep.mubr.msk.f32.mxu0 %vm48_vm1, %v270_v48  ;;  %v654_v43 = vld [vmem:[%s3761_s3 + $0x8] sm:$0xff] }
  0x2a   :  { %2626 = vmatprep.subr.bf16.mxu0 %v2625_v47  ;;  %2654 = vmatprep.subr.bf16.mxu1 %v2653_v15  ;;  %v2671_v44 = vpack.c.bf16 %v654_v43, %v653_v41  ;;  %v1862_v43 = vld [vmem:[%s3761_s3 + $0x168] sm:$0xff] }
  0x2c   :  { %2214 = vmatmul.mubr.msk.f32.gmra.mrb[2].mxu0 %vm48_vm1, %v271_v51  ;;  %2656 = vmatpush3.bf16.msra.mxu1 %v2653_v15  ;;  %v1843_v15 = vld [vmem:[%s3761_s3 + $0xe8] sm:$0xff] }
  0x2d   :  { %2628 = vmatpush3.bf16.msra.mxu0 %v2625_v47  ;;  %2228 = vmatprep.mubr.msk.f32.mxu0 %vm48_vm1, %v380_v53  ;;  %v655_v53 = vld [vmem:[%s3761_s3 + $0x10] sm:$0xff] }
  0x2e   :  { %2630 = vmatprep.subr.bf16.mxu0 %v2629_v52  ;;  %2658 = vmatprep.subr.bf16.mxu1 %v2657_v23  ;;  %v2675_v55 = vpack.c.bf16 %v656_v54, %v655_v53 }
  0x30   :  { %2660 = vmatpush3.bf16.msra.mxu1 %v2657_v23 }
  0x31   :  { %2632 = vmatpush3.bf16.msra.mxu0 %v2629_v52  ;;  %2662 = vmatprep.subr.bf16.mxu1 %v2661_v32 }
  0x32   :  { %2634 = vmatprep.subr.bf16.mxu0 %v2633_v56 }
  0x34   :  { %2229 = vmatmul.mubr.msk.f32.vlgmr.msra.gmra.mrb[0].mxu0 %vm48_vm1, %v381_v59  ;;  %2664 = vmatpush3.bf16.msra.mxu1 %v2661_v32 }
  0x35   :  { %2636 = vmatpush3.bf16.msra.mxu0 %v2633_v56  ;;  %2231 = vmatprep.mubr.msk.f32.mxu0 %vm48_vm1, %v382_v61  ;;  %v659_v61 = vld [vmem:[%s3761_s3 + $0x30] sm:$0xff] }
  0x36   :  { %2638 = vmatprep.subr.bf16.mxu0 %v2637_v60  ;;  %2667 = vmatprep.subr.msk.bf16.mxu1 %vm3210_vm6, %v2665_v37  ;;  %v2683_v63 = vpack.c.bf16 %v660_v62, %v659_v61  ;;  %v1876_v62 = vld [vmem:[%s3761_s3 + $0x1c0] sm:$0xff] }
  0x38   :  { %2232 = vmatmul.mubr.msk.f32.gmra.mrb[2].mxu0 %vm48_vm1, %v383_v0  ;;  %2670 = vmatpush3.bf16.msk.msra.mxu1 %vm3210_vm6, %v2665_v37  ;;  %v661_v0 = vld [vmem:[%s3761_s3 + $0x40] sm:$0xff] }
  0x39   :  { %2640 = vmatpush3.bf16.msra.mxu0 %v2637_v60  ;;  %2246 = vmatprep.mubr.msk.f32.mxu0 %vm48_vm1, %v492_v2  ;;  %v2679_v60 = vpack.c.bf16 %v658_v58, %v657_v57 }
  0x3a   :  { %2642 = vmatprep.subr.bf16.mxu0 %v2641_v1  ;;  %2672 = vmatprep.subr.bf16.mxu1 %v2671_v44 }
  0x3d   :  { %2644 = vmatpush3.bf16.msra.mxu0 %v2641_v1  ;;  %v662_v1 = vld [vmem:[%s3761_s3 + $0x48] sm:$0xff] }
  0x3e   :  { %v2687_v2 = vpack.c.bf16 %v662_v1, %v661_v0  ;;  %v1878_v1 = vld [vmem:[%s3761_s3 + $0x1d0] sm:$0xff] }
  0x40   :  { %2247 = vmatmul.mubr.msk.f32.vlgmr.msra.gmra.mrb[0].mxu0 %vm48_vm1, %v493_v3  ;;  %v663_v3 = vld [vmem:[%s3761_s3 + $0x50] sm:$0xff] }
  0x41   :  { %2249 = vmatprep.mubr.msk.f32.mxu0 %vm48_vm1, %v494_v4  ;;  %v664_v4 = vld [vmem:[%s3761_s3 + $0x58] sm:$0x7f] }
  0x44   :  { %2250 = vmatmul.mubr.msk.f32.gmra.mrb[2].mxu0 %vm48_vm1, %v495_v6  ;;  %v2691_v6 = vpack.c.bf16 %v664_v4, %v663_v3 }
  0x45   :  { %2419 = vmatprep.mubr.msk.f32.mxu0 %vm2971_vm8, %v2967_v5 }
 0x113   :  { %v2248_v17 = vpop.f32.mrb[0].mxu0 }
 0x114   :  { %v612_v18 = vadd.f32 %v2248_v17, %v1819_v16  ;;  %v581_v19 = vpop.f32.mrb[1].mxu0  ;;  %v2705_v17 = vpack.c.bf16 %v1843_v15, %v1842_v14  ;;  %v2826_v14 = vpack.c.bf16 %v1905_v11, %v1904_v8  ;;  %v1906_v15 = vld [vmem:[%s3763_s5 + $0x110] sm:$0xff] }
 0x115   :  { %v611_v22 = vadd.f32 %v1819_v16, %v581_v19  ;;  %v1845_v19 = vld [vmem:[%s3761_s3 + $0xf8] sm:$0xff]  ;;  %v1179_v8 = vld [vmem:[%s3763_s5 + $0x10] sm:$0xff] }
 0x116   :  { %v616_v24 = vmax.f32 %v612_v18, 0.0  ;;  %v1844_v18 = vld [vmem:[%s3761_s3 + $0xf0] sm:$0xff] }
 0x117   :  { %v615_v25 = vmax.f32 %v611_v22, 0.0  ;;  %v2251_v26 = vpop.f32.mrb[2].mxu0  ;;  %v2709_v20 = vpack.c.bf16 %v1845_v19, %v1844_v18  ;;  %v1847_v22 = vld [vmem:[%s3761_s3 + $0x108] sm:$0xff]  ;;  %v1888_v19 = vld [vmem:[%s3763_s5 + $0xa0] sm:$0xff] }
 0x118   :  { %621 = vst.msk [vmem:[#allocation3 + $0x8] sm:$0xff] %vm619_vm2, %v616_v24  ;;  %v614_v27 = vadd.f32 %v2251_v26, %v1819_v16  ;;  %v591_v28 = vpop.f32.mrb[3].mxu0  ;;  %v2713_v23 = vpack.c.bf16 %v1847_v22, %v1846_v21  ;;  %v1848_v24 = vld [vmem:[%s3761_s3 + $0x110] sm:$0xff]  ;;  %v1908_v21 = vld [vmem:[%s3763_s5 + $0x120] sm:$0xff]  ;;  %v1909_v22 = vld [vmem:[%s3763_s5 + $0x128] sm:$0xff] }
 0x119   :  { %620 = vst.msk [vmem:[#allocation3] sm:$0xff] %vm619_vm2, %v615_v25  ;;  %v613_v31 = vadd.f32 %v1819_v16, %v591_v28  ;;  %v1849_v25 = vld [vmem:[%s3761_s3 + $0x118] sm:$0x7f]  ;;  %v1854_v28 = vld [vmem:[%s3761_s3 + $0x128] sm:$0xff] }
 0x11a   :  { %v618_v33 = vmax.f32 %v614_v27, 0.0  ;;  %v2717_v26 = vpack.c.bf16 %v1849_v25, %v1848_v24  ;;  %v1853_v27 = vld [vmem:[%s3761_s3 + $0x120] sm:$0xff]  ;;  %v2832_v24 = vpack.c.bf16 %v1909_v22, %v1908_v21  ;;  %v1890_v25 = vld [vmem:[%s3763_s5 + $0xb0] sm:$0xff]  ;;  %v1186_v21 = vld [vmem:[%s3763_s5 + $0x48] sm:$0xff] }
 0x11b   :  { %v617_v34 = vmax.f32 %v613_v31, 0.0  ;;  %v2723_v29 = vpack.c.bf16 %v1854_v28, %v1853_v27  ;;  %v1856_v31 = vld [vmem:[%s3761_s3 + $0x138] sm:$0xff]  ;;  %v1910_v27 = vld [vmem:[%s3763_s5 + $0x130] sm:$0xff] }
 0x11c   :  { %623 = vst.msk [vmem:[#allocation3 + $0x18] sm:$0xff] %vm619_vm2, %v618_v33  ;;  %v2727_v32 = vpack.c.bf16 %v1856_v31, %v1855_v30  ;;  %v1911_v28 = vld [vmem:[%s3763_s5 + $0x138] sm:$0xff]  ;;  %v1892_v31 = vld [vmem:[%s3763_s5 + $0xc0] sm:$0xff] }
 0x11d   :  { %622 = vst.msk [vmem:[#allocation3 + $0x10] sm:$0xff] %vm619_vm2, %v617_v34  ;;  %v1857_v34 = vld [vmem:[%s3761_s3 + $0x140] sm:$0xff]  ;;  %v2835_v30 = vpack.c.bf16 %v1911_v28, %v1910_v27  ;;  %v1190_v27 = vld [vmem:[%s3763_s5 + $0x68] sm:$0xff] }
 0x11e   :  { %v2731_v37 = vpack.c.bf16 %v1858_v35, %v1857_v34  ;;  %v1913_v34 = vld [vmem:[%s3763_s5 + $0x148] sm:$0xff] }
 0x120   :  { %v624_v39 = vld [vmem:[#allocation3] ss:$2 sm:$0xff]  ;;  %v628_v40 = vld [vmem:[#allocation3 + $0x1] ss:$2 sm:$0xff] }
 0x121   :  { %v631_v42 = vmax.f32 %v624_v39, %v628_v40  ;;  %v1859_v39 = vld [vmem:[%s3761_s3 + $0x150] sm:$0xff]  ;;  %v1860_v40 = vld [vmem:[%s3761_s3 + $0x158] sm:$0xff] }
 0x122   :  { %v2735_v41 = vpack.c.bf16 %v1860_v40, %v1859_v39  ;;  %v1895_v39 = vld [vmem:[%s3763_s5 + $0xd8] sm:$0xff]  ;;  %v1914_v40 = vld [vmem:[%s3763_s5 + $0x150] sm:$0xff] }
 0x123   :  { %635 = vrot.lane.b32.xlu0 %v631_v42, %s2969_s13 }
 0x124   :  { %v626_v45 = vld [vmem:[#allocation3 + $0x10] ss:$2 sm:$0xff]  ;;  %v630_v46 = vld [vmem:[#allocation3 + $0x11] ss:$2 sm:$0xff] }
 0x125   :  { %v632_v47 = vmax.f32 %v626_v45, %v630_v46  ;;  %v1863_v45 = vld [vmem:[%s3761_s3 + $0x170] sm:$0xff]  ;;  %v1864_v46 = vld [vmem:[%s3761_s3 + $0x178] sm:$0x7f] }
 0x127   :  { %637 = vrot.lane.b32.xlu0 %v632_v47, %s2969_s13 }
 0x195   :  { %v636_v48 = vpop.permute.xlu0 %635 }
 0x196   :  { %v641_v49 = vmax.f32 %v631_v42, %v636_v48  ;;  %v1861_v42 = vld [vmem:[%s3761_s3 + $0x160] sm:$0xff] }
 0x197   :  { %v1868_v48 = vld [vmem:[%s3761_s3 + $0x180] sm:$0xff] }
 0x198   :  { %649 = vst.msk [vmem:[#allocation4 + $0x2] sm:$0xff] %vm648_vm7, %v641_v49  ;;  %v1869_v49 = vld [vmem:[%s3761_s3 + $0x188] sm:$0xff] }
 0x199   :  { %v638_v50 = vpop.permute.xlu0 %637 }
 0x19a   :  { %v642_v51 = vmax.f32 %v632_v47, %v638_v50  ;;  %v2743_v47 = vpack.c.bf16 %v1864_v46, %v1863_v45  ;;  %v2749_v50 = vpack.c.bf16 %v1869_v49, %v1868_v48  ;;  %v1896_v49 = vld [vmem:[%s3763_s5 + $0xe0] sm:$0xff] }
 0x19c   :  { %650 = vst.msk [vmem:[#allocation4 + $0x12] sm:$0xff] %vm648_vm7, %v642_v51  ;;  %v1870_v51 = vld [vmem:[%s3761_s3 + $0x190] sm:$0xff] }
 0x19f   :  { %v665_v52 = vld [vmem:[#allocation4 + $0x1] sm:$0xff] }
 0x1a0   :  { %2276 = vmatprep.mubr.msk.f32.mxu1 %vm648_vm7, %v665_v52  ;;  %v651_v59 = vld [vmem:[#allocation4] sm:$0xff]  ;;  %v1871_v52 = vld [vmem:[%s3761_s3 + $0x198] sm:$0xff] }
 0x1a1   :  { %v849_v16 = vld [vmem:[#allocation4 + $0x2] sm:$0xff]  ;;  %v2753_v53 = vpack.c.bf16 %v1871_v52, %v1870_v51 }
 0x1a2   :  { %v950_v36 = vld [vmem:[#allocation4 + $0x3] sm:$0xff] }
 0x1a3   :  { %v666_v56 = vld [vmem:[#allocation4 + $0x11] sm:$0xff]  ;;  %v1051_v57 = vld [vmem:[#allocation4 + $0x4] sm:$0xff] }
 0x1a4   :  { %2277 = vmatmul.mubr.msk.f32.vlgmr.msra.gmra.mrb[0].mxu1 %vm648_vm7, %v666_v56  ;;  %v652_v13 = vld [vmem:[#allocation4 + $0x10] sm:$0xff]  ;;  %v1873_v56 = vld [vmem:[%s3761_s3 + $0x1a8] sm:$0xff] }
 0x1a5   :  { %2674 = vmatpush3.bf16.msra.mxu1 %v2671_v44  ;;  %2303 = vmatprep.mubr.msk.f32.mxu1 %vm648_vm7, %v651_v59  ;;  %v850_v33 = vld [vmem:[#allocation4 + $0x12] sm:$0xff]  ;;  %v2739_v44 = vpack.c.bf16 %v1862_v43, %v1861_v42  ;;  %v1874_v59 = vld [vmem:[%s3761_s3 + $0x1b0] sm:$0xff] }
 0x1a6   :  { %2676 = vmatprep.subr.bf16.mxu1 %v2675_v55  ;;  %v951_v54 = vld [vmem:[#allocation4 + $0x13] sm:$0xff] }
 0x1a7   :  { %v1052_v4 = vld [vmem:[#allocation4 + $0x14] sm:$0xff] }
 0x1a9   :  { %2678 = vmatpush3.bf16.msra.mxu1 %v2675_v55  ;;  %v1872_v55 = vld [vmem:[%s3761_s3 + $0x1a0] sm:$0xff] }
 0x1aa   :  { %2680 = vmatprep.subr.bf16.mxu1 %v2679_v60  ;;  %v2757_v58 = vpack.c.bf16 %v1873_v56, %v1872_v55 }
 0x1ad   :  { %2682 = vmatpush3.bf16.msra.mxu1 %v2679_v60  ;;  %v1875_v60 = vld [vmem:[%s3761_s3 + $0x1b8] sm:$0xff] }
 0x1ae   :  { %2684 = vmatprep.subr.bf16.mxu1 %v2683_v63  ;;  %v2761_v61 = vpack.c.bf16 %v1875_v60, %v1874_v59  ;;  %v1918_v59 = vld [vmem:[%s3763_s5 + $0x170] sm:$0xff] }
 0x1b1   :  { %2686 = vmatpush3.bf16.msra.mxu1 %v2683_v63  ;;  %v1877_v63 = vld [vmem:[%s3761_s3 + $0x1c8] sm:$0xff] }
 0x1b2   :  { %2688 = vmatprep.subr.bf16.mxu1 %v2687_v2  ;;  %v2765_v0 = vpack.c.bf16 %v1877_v63, %v1876_v62 }
 0x1b5   :  { %2690 = vmatpush3.bf16.msra.mxu1 %v2687_v2  ;;  %v1879_v2 = vld [vmem:[%s3761_s3 + $0x1d8] sm:$0x7f] }
 0x1b6   :  { %2693 = vmatprep.subr.msk.bf16.mxu1 %vm3210_vm6, %v2691_v6  ;;  %v2769_v3 = vpack.c.bf16 %v1879_v2, %v1878_v1 }
 0x1b9   :  { %2696 = vmatpush3.bf16.msk.msra.mxu1 %vm3210_vm6, %v2691_v6  ;;  %v1884_v6 = vld [vmem:[%s3763_s5 + $0x80] sm:$0xff] }
 0x1ba   :  { %2698 = vmatprep.subr.bf16.mxu1 %v2697_v9  ;;  %v2776_v10 = vpack.c.bf16 %v1885_v7, %v1884_v6  ;;  %v1178_v6 = vld [vmem:[%s3763_s5 + $0x8] sm:$0xff] }
 0x1bc   :  { %2304 = vmatmul.mubr.msk.f32.vlgmr.msra.gmra.mrb[0].mxu1 %vm648_vm7, %v652_v13  ;;  %v1887_v13 = vld [vmem:[%s3763_s5 + $0x98] sm:$0xff] }
 0x1bd   :  { %2700 = vmatpush3.bf16.msra.mxu1 %v2697_v9  ;;  %2330 = vmatprep.mubr.msk.f32.mxu1 %vm648_vm7, %v849_v16  ;;  %v2970_v9 = vmov 0.0|0.0   ;;  %v1907_v16 = vld [vmem:[%s3763_s5 + $0x118] sm:$0xff] }
 0x1be   :  { %2702 = vmatprep.subr.bf16.mxu1 %v2701_v12  ;;  %2775 = vmatprep.subr.bf16.mxu0 %v2970_v9  ;;  %v2829_v18 = vpack.c.bf16 %v1907_v16, %v1906_v15  ;;  %v1182_v15 = vld [vmem:[%s3763_s5 + $0x28] sm:$0xff] }
 0x1bf   :  { %2777 = vmatpush3.bf16.msra.mxu0 %v2776_v10  ;;  %v1180_v10 = vld [vmem:[%s3763_s5 + $0x18] sm:$0xff] }
 0x1c0   :  { %2778 = vmatprep.subr.bf16.mxu0 %v2970_v9 }
 0x1c1   :  { %2704 = vmatpush3.bf16.msra.mxu1 %v2701_v12  ;;  %v1886_v12 = vld [vmem:[%s3763_s5 + $0x90] sm:$0xff] }
 0x1c2   :  { %2706 = vmatprep.subr.bf16.mxu1 %v2705_v17 }
 0x1c5   :  { %2708 = vmatpush3.bf16.msra.mxu1 %v2705_v17  ;;  %v2779_v17 = vpack.c.bf16 %v1887_v13, %v1886_v12  ;;  %v2804_v13 = vpack.c.bf16 %v1180_v10, %v1179_v8  ;;  %v1574_v8 = vld [vmem:[%s3765_s7 + $0x48] sm:$0xff] }
 0x1c6   :  { %2710 = vmatprep.subr.bf16.mxu1 %v2709_v20 }
 0x1c7   :  { %2780 = vmatpush3.bf16.msra.mxu0 %v2779_v17  ;;  %v1183_v17 = vld [vmem:[%s3763_s5 + $0x30] sm:$0xff] }
 0x1c8   :  { %2781 = vmatprep.subr.bf16.mxu0 %v2970_v9 }
 0x1c9   :  { %2712 = vmatpush3.bf16.msra.mxu1 %v2709_v20  ;;  %v1889_v20 = vld [vmem:[%s3763_s5 + $0xa8] sm:$0xff] }
 0x1ca   :  { %2714 = vmatprep.subr.bf16.mxu1 %v2713_v23 }
 0x1cd   :  { %2716 = vmatpush3.bf16.msra.mxu1 %v2713_v23  ;;  %v2782_v23 = vpack.c.bf16 %v1889_v20, %v1888_v19  ;;  %v1185_v20 = vld [vmem:[%s3763_s5 + $0x40] sm:$0xff] }
 0x1ce   :  { %2719 = vmatprep.subr.msk.bf16.mxu1 %vm3210_vm6, %v2717_v26  ;;  %v2813_v22 = vpack.c.bf16 %v1186_v21, %v1185_v20  ;;  %v1664_v20 = vld [vmem:[%s3767_s9 + $0x10] sm:$0xff] }
 0x1cf   :  { %2783 = vmatpush3.bf16.msra.mxu0 %v2782_v23  ;;  %v1187_v23 = vld [vmem:[%s3763_s5 + $0x50] sm:$0xff] }
 0x1d0   :  { %2784 = vmatprep.subr.bf16.mxu0 %v2970_v9 }
 0x1d1   :  { %2722 = vmatpush3.bf16.msk.msra.mxu1 %vm3210_vm6, %v2717_v26  ;;  %v1891_v26 = vld [vmem:[%s3763_s5 + $0xb8] sm:$0xff] }
 0x1d2   :  { %2724 = vmatprep.subr.bf16.mxu1 %v2723_v29 }
 0x1d4   :  { %2331 = vmatmul.mubr.msk.f32.vlgmr.msra.gmra.mrb[0].mxu1 %vm648_vm7, %v850_v33  ;;  %v1912_v33 = vld [vmem:[%s3763_s5 + $0x140] sm:$0xff] }
 0x1d5   :  { %2726 = vmatpush3.bf16.msra.mxu1 %v2723_v29  ;;  %2357 = vmatprep.mubr.msk.f32.mxu1 %vm648_vm7, %v950_v36  ;;  %v2785_v29 = vpack.c.bf16 %v1891_v26, %v1890_v25  ;;  %v2838_v36 = vpack.c.bf16 %v1913_v34, %v1912_v33  ;;  %v1189_v26 = vld [vmem:[%s3763_s5 + $0x60] sm:$0xff]  ;;  %v1923_v33 = vld [vmem:[%s3763_s5 + $0x188] sm:$0xff] }
 0x1d6   :  { %2728 = vmatprep.subr.bf16.mxu1 %v2727_v32  ;;  %v2819_v28 = vpack.c.bf16 %v1190_v27, %v1189_v26  ;;  %v1668_v27 = vld [vmem:[%s3767_s9 + $0x30] sm:$0xff] }
 0x1d7   :  { %2786 = vmatpush3.bf16.msra.mxu0 %v2785_v29  ;;  %v1191_v29 = vld [vmem:[%s3763_s5 + $0x70] sm:$0xff] }
 0x1d8   :  { %2787 = vmatprep.subr.bf16.mxu0 %v2970_v9 }
 0x1d9   :  { %2730 = vmatpush3.bf16.msra.mxu1 %v2727_v32  ;;  %v1893_v32 = vld [vmem:[%s3763_s5 + $0xc8] sm:$0xff] }
 0x1da   :  { %2732 = vmatprep.subr.bf16.mxu1 %v2731_v37  ;;  %v2788_v35 = vpack.c.bf16 %v1893_v32, %v1892_v31  ;;  %v1922_v32 = vld [vmem:[%s3763_s5 + $0x180] sm:$0xff] }
 0x1db   :  { %v2851_v34 = vpack.c.bf16 %v1923_v33, %v1922_v32 }
 0x1dc   :  { %2789 = vmatpush3.bf16.msra.mxu0 %v2788_v35  ;;  %v1924_v35 = vld [vmem:[%s3763_s5 + $0x190] sm:$0xff] }
 0x1dd   :  { %2734 = vmatpush3.bf16.msra.mxu1 %v2731_v37  ;;  %v1894_v37 = vld [vmem:[%s3763_s5 + $0xd0] sm:$0xff]  ;;  %2790 = vmatprep.subr.bf16.mxu0 %v2970_v9 }
 0x1de   :  { %2736 = vmatprep.subr.bf16.mxu1 %v2735_v41  ;;  %v2791_v42 = vpack.c.bf16 %v1895_v39, %v1894_v37 }
 0x1e0   :  { %2792 = vmatpush3.bf16.msra.mxu0 %v2791_v42 }
 0x1e1   :  { %2738 = vmatpush3.bf16.msra.mxu1 %v2735_v41  ;;  %v1915_v41 = vld [vmem:[%s3763_s5 + $0x158] sm:$0xff]  ;;  %2793 = vmatprep.subr.bf16.mxu0 %v2970_v9 }
 0x1e2   :  { %2740 = vmatprep.subr.bf16.mxu1 %v2739_v44  ;;  %v2841_v43 = vpack.c.bf16 %v1915_v41, %v1914_v40  ;;  %v1926_v40 = vld [vmem:[%s3763_s5 + $0x1a0] sm:$0xff]  ;;  %v1927_v41 = vld [vmem:[%s3763_s5 + $0x1a8] sm:$0xff] }
 0x1e3   :  { %v2857_v42 = vpack.c.bf16 %v1927_v41, %v1926_v40  ;;  %v1940_v40 = vld [vmem:[%s3764_s6] ss:$0 sm:$0xff] }
 0x1e5   :  { %2742 = vmatpush3.bf16.msra.mxu1 %v2739_v44  ;;  %v1883_v44 = vld [vmem:[%s3762_s4] ss:$0 sm:$0xff] }
 0x1e6   :  { %2745 = vmatprep.subr.msk.bf16.mxu1 %vm3210_vm6, %v2743_v47 }
 0x1e9   :  { %2748 = vmatpush3.bf16.msk.msra.mxu1 %vm3210_vm6, %v2743_v47 }
 0x1ea   :  { %2750 = vmatprep.subr.bf16.mxu1 %v2749_v50 }
 0x1ec   :  { %2358 = vmatmul.mubr.msk.f32.vlgmr.msra.gmra.mrb[0].mxu1 %vm648_vm7, %v951_v54  ;;  %v1917_v54 = vld [vmem:[%s3763_s5 + $0x168] sm:$0xff] }
 0x1ed   :  { %2752 = vmatpush3.bf16.msra.mxu1 %v2749_v50  ;;  %2384 = vmatprep.mubr.msk.f32.mxu1 %vm648_vm7, %v1051_v57  ;;  %v1897_v50 = vld [vmem:[%s3763_s5 + $0xe8] sm:$0xff]  ;;  %v1898_v57 = vld [vmem:[%s3763_s5 + $0xf0] sm:$0xff] }
 0x1ee   :  { %2754 = vmatprep.subr.bf16.mxu1 %v2753_v53  ;;  %v2794_v52 = vpack.c.bf16 %v1897_v50, %v1896_v49  ;;  %v1932_v49 = vld [vmem:[%s3763_s5 + $0x1d0] sm:$0xff]  ;;  %v1933_v50 = vld [vmem:[%s3763_s5 + $0x1d8] sm:$0xff] }
 0x1f0   :  { %2795 = vmatpush3.bf16.msra.mxu0 %v2794_v52  ;;  %v1934_v52 = vld [vmem:[%s3763_s5 + $0x1e0] sm:$0xff] }
 0x1f1   :  { %2756 = vmatpush3.bf16.msra.mxu1 %v2753_v53  ;;  %v1916_v53 = vld [vmem:[%s3763_s5 + $0x160] sm:$0xff]  ;;  %2796 = vmatprep.subr.bf16.mxu0 %v2970_v9 }
 0x1f2   :  { %2758 = vmatprep.subr.bf16.mxu1 %v2757_v58  ;;  %v2844_v56 = vpack.c.bf16 %v1917_v54, %v1916_v53  ;;  %v1935_v53 = vld [vmem:[%s3763_s5 + $0x1e8] sm:$0xff] }
 0x1f3   :  { %v2869_v54 = vpack.c.bf16 %v1935_v53, %v1934_v52 }
 0x1f5   :  { %2760 = vmatpush3.bf16.msra.mxu1 %v2757_v58  ;;  %v1899_v58 = vld [vmem:[%s3763_s5 + $0xf8] sm:$0x7f] }
 0x1f6   :  { %2762 = vmatprep.subr.bf16.mxu1 %v2761_v61  ;;  %v2797_v60 = vpack.c.bf16 %v1899_v58, %v1898_v57 }
 0x1f8   :  { %2799 = vmatpush3.bf16.msk.msra.mxu0 %vm3210_vm6, %v2797_v60  ;;  %v1566_v60 = vld [vmem:[%s3765_s7 + $0x8] sm:$0xff] }
 0x1f9   :  { %2764 = vmatpush3.bf16.msra.mxu1 %v2761_v61  ;;  %v1919_v61 = vld [vmem:[%s3763_s5 + $0x178] sm:$0x7f]  ;;  %2800 = vmatprep.subr.bf16.mxu0 %v2970_v9 }
 0x1fa   :  { %2766 = vmatprep.subr.bf16.mxu1 %v2765_v0  ;;  %v2847_v62 = vpack.c.bf16 %v1919_v61, %v1918_v59  ;;  %v1565_v59 = vld [vmem:[%s3765_s7] sm:$0xff] }
 0x1fb   :  { %v2876_v61 = vpack.c.bf16 %v1566_v60, %v1565_v59 }
 0x1fd   :  { %2768 = vmatpush3.bf16.msra.mxu1 %v2765_v0 }
 0x1fe   :  { %2771 = vmatprep.subr.msk.bf16.mxu1 %vm3210_vm6, %v2769_v3 }
 0x201   :  { %2774 = vmatpush3.bf16.msk.msra.mxu1 %vm3210_vm6, %v2769_v3 }
 0x202   :  { %2825 = vmatprep.subr.bf16.mxu1 %v2970_v9 }
 0x204   :  { %2385 = vmatmul.mubr.msk.f32.vlgmr.msra.gmra.mrb[0].mxu1 %vm648_vm7, %v1052_v4  ;;  %v1177_v4 = vld [vmem:[%s3763_s5] sm:$0xff] }
 0x205   :  { %2827 = vmatpush3.bf16.msra.mxu1 %v2826_v14  ;;  %2489 = vmatprep.mubr.msk.f32.mxu1 %vm2971_vm8, %v2967_v5  ;;  %v2801_v7 = vpack.c.bf16 %v1178_v6, %v1177_v4  ;;  %v1181_v14 = vld [vmem:[%s3763_s5 + $0x20] sm:$0xff]  ;;  %v1572_v4 = vld [vmem:[%s3765_s7 + $0x38] sm:$0xff] }
 0x206   :  { %2828 = vmatprep.subr.bf16.mxu1 %v2970_v9  ;;  %v2807_v16 = vpack.c.bf16 %v1182_v15, %v1181_v14  ;;  %v1577_v14 = vld [vmem:[%s3765_s7 + $0x60] sm:$0xff]  ;;  %v1578_v15 = vld [vmem:[%s3765_s7 + $0x68] sm:$0xff] }
 0x209   :  { %2830 = vmatpush3.bf16.msra.mxu1 %v2829_v18  ;;  %v1184_v18 = vld [vmem:[%s3763_s5 + $0x38] sm:$0xff] }
 0x20a   :  { %2831 = vmatprep.subr.bf16.mxu1 %v2970_v9  ;;  %v2810_v19 = vpack.c.bf16 %v1184_v18, %v1183_v17  ;;  %v1579_v17 = vld [vmem:[%s3765_s7 + $0x70] sm:$0xff]  ;;  %v1662_v18 = vld [vmem:[%s3767_s9] sm:$0xff] }
 0x20d   :  { %2833 = vmatpush3.bf16.msra.mxu1 %v2832_v24  ;;  %v1188_v24 = vld [vmem:[%s3763_s5 + $0x58] sm:$0xff] }
 0x20e   :  { %2834 = vmatprep.subr.bf16.mxu1 %v2970_v9  ;;  %v2816_v25 = vpack.c.bf16 %v1188_v24, %v1187_v23  ;;  %v1666_v24 = vld [vmem:[%s3767_s9 + $0x20] sm:$0xff] }
 0x211   :  { %2836 = vmatpush3.bf16.msra.mxu1 %v2835_v30  ;;  %v1192_v30 = vld [vmem:[%s3763_s5 + $0x78] sm:$0x7f] }
 0x212   :  { %2837 = vmatprep.subr.bf16.mxu1 %v2970_v9  ;;  %v2822_v31 = vpack.c.bf16 %v1192_v30, %v1191_v29 }
 0x215   :  { %2839 = vmatpush3.bf16.msra.mxu1 %v2838_v36  ;;  %v1925_v36 = vld [vmem:[%s3763_s5 + $0x198] sm:$0xff] }
 0x216   :  { %2840 = vmatprep.subr.bf16.mxu1 %v2970_v9  ;;  %v2854_v39 = vpack.c.bf16 %v1925_v36, %v1924_v35 }
 0x219   :  { %2842 = vmatpush3.bf16.msra.mxu1 %v2841_v43  ;;  %v1928_v43 = vld [vmem:[%s3763_s5 + $0x1b0] sm:$0xff] }
 0x21a   :  { %2843 = vmatprep.subr.bf16.mxu1 %v2970_v9 }
 0x21d   :  { %2845 = vmatpush3.bf16.msra.mxu1 %v2844_v56  ;;  %v1937_v56 = vld [vmem:[%s3763_s5 + $0x1f8] sm:$0x7f] }
 0x21e   :  { %2846 = vmatprep.subr.bf16.mxu1 %v2970_v9 }
 0x221   :  { %2849 = vmatpush3.bf16.msk.msra.mxu1 %vm3210_vm6, %v2847_v62  ;;  %v1568_v62 = vld [vmem:[%s3765_s7 + $0x18] sm:$0xff] }
 0x222   :  { %2875 = vmatprep.subr.bf16.mxu1 %v2970_v9 }
 0x2d7   :  { %v2386_v45 = vpop.f32.mrb[0].mxu1 }
 0x2d8   :  { %v1160_v46 = vadd.f32 %v2386_v45, %v1883_v44  ;;  %v1141_v47 = vpop.f32.mrb[1].mxu1 }
 0x2d9   :  { %v1159_v48 = vadd.f32 %v1883_v44, %v1141_v47  ;;  %v1929_v44 = vld [vmem:[%s3763_s5 + $0x1b8] sm:$0xff]  ;;  %v1931_v47 = vld [vmem:[%s3763_s5 + $0x1c8] sm:$0xff] }
 0x2da   :  { %v1162_v51 = vmax.f32 %v1160_v46, 0.0  ;;  %v2860_v45 = vpack.c.bf16 %v1929_v44, %v1928_v43  ;;  %v1930_v46 = vld [vmem:[%s3763_s5 + $0x1c0] sm:$0xff] }
 0x2db   :  { %v1161_v55 = vmax.f32 %v1159_v48, 0.0  ;;  %v2863_v48 = vpack.c.bf16 %v1931_v47, %v1930_v46  ;;  %v1672_v47 = vld [vmem:[%s3767_s9 + $0x50] sm:$0xf] }
 0x2dc   :  { %1164 = vst [vmem:[#allocation5 + $0x8] sm:$0xff] %v1162_v51  ;;  %v2866_v51 = vpack.c.bf16 %v1933_v50, %v1932_v49 }
 0x2dd   :  { %1163 = vst [vmem:[#allocation5] sm:$0xff] %v1161_v55  ;;  %v1936_v55 = vld [vmem:[%s3763_s5 + $0x1f0] sm:$0xff] }
 0x2de   :  { %v2872_v57 = vpack.c.bf16 %v1937_v56, %v1936_v55 }
 0x2e4   :  { %v1165_v63 = vld [vmem:[#allocation5] ss:$2 sm:$0xff]  ;;  %v1167_v0 = vld [vmem:[#allocation5 + $0x1] ss:$2 sm:$0xff] }
 0x2e5   :  { %v1168_v1 = vmax.f32 %v1165_v63, %v1167_v0  ;;  %v2879_v63 = vpack.c.bf16 %v1568_v62, %v1567_v38  ;;  %v1569_v0 = vld [vmem:[%s3765_s7 + $0x20] sm:$0xff] }
 0x2e7   :  { %1170 = vrot.lane.b32.xlu1 %v1168_v1, %s2969_s13 }
 0x359   :  { %v1171_v2 = vpop.permute.xlu1 %1170 }
 0x35a   :  { %v1173_v3 = vmax.f32 %v1168_v1, %v1171_v2  ;;  %v1570_v1 = vld [vmem:[%s3765_s7 + $0x28] sm:$0xff] }
 0x35b   :  { %v2882_v2 = vpack.c.bf16 %v1570_v1, %v1569_v0 }
 0x35c   :  { %1175 = vst.msk [vmem:[#allocation6] sm:$0xff] %vm1174_vm9, %v1173_v3  ;;  %v1571_v3 = vld [vmem:[%s3765_s7 + $0x30] sm:$0xff] }
 0x35d   :  { %v2885_v6 = vpack.c.bf16 %v1572_v4, %v1571_v3 }
 0x363   :  { %v1194_v11 = vld [vmem:[#allocation6 + $0x1] ss:$4 sm:$0x3]  ;;  %v1365_v12 = vld [vmem:[#allocation6 + $0x2] ss:$4 sm:$0x3] }
 0x364   :  { %2420 = vmatmul.mubr.msk.f32.vlgmr.msra.gmra.mrb[4].mxu0 %vm1174_vm9, %v1194_v11  ;;  %2490 = vmatmul.mubr.msk.f32.vlgmr.msra.gmra.mrb[2].mxu1 %vm1174_vm9, %v1365_v12  ;;  %v1176_v37 = vld [vmem:[#allocation6] ss:$4 sm:$0x3]  ;;  %v1461_v58 = vld [vmem:[#allocation6 + $0x3] ss:$4 sm:$0x3] }
 0x365   :  { %2802 = vmatpush3.bf16.msra.mxu0 %v2801_v7  ;;  %2454 = vmatprep.mubr.msk.f32.mxu0 %vm2971_vm8, %v2967_v5  ;;  %v1573_v7 = vld [vmem:[%s3765_s7 + $0x40] sm:$0xff]  ;;  %v1575_v11 = vld [vmem:[%s3765_s7 + $0x50] sm:$0xff]  ;;  %v1576_v12 = vld [vmem:[%s3765_s7 + $0x58] sm:$0xff] }
 0x366   :  { %2803 = vmatprep.subr.bf16.mxu0 %v2970_v9  ;;  %2557 = vmatprep.mubr.msk.f32.mxu1 %vm2971_vm8, %v2967_v5  ;;  %v2888_v10 = vpack.c.bf16 %v1574_v8, %v1573_v7 }
 0x367   :  { %2877 = vmatpush3.bf16.msra.mxu1 %v2876_v61 }
 0x368   :  { %2878 = vmatprep.subr.bf16.mxu1 %v2970_v9 }
 0x369   :  { %2805 = vmatpush3.bf16.msra.mxu0 %v2804_v13  ;;  %v2891_v13 = vpack.c.bf16 %v1576_v12, %v1575_v11 }
 0x36a   :  { %2806 = vmatprep.subr.bf16.mxu0 %v2970_v9 }
 0x36b   :  { %2880 = vmatpush3.bf16.msra.mxu1 %v2879_v63 }
 0x36c   :  { %2881 = vmatprep.subr.bf16.mxu1 %v2970_v9 }
 0x36d   :  { %2808 = vmatpush3.bf16.msra.mxu0 %v2807_v16  ;;  %v2894_v16 = vpack.c.bf16 %v1578_v15, %v1577_v14 }
 0x36e   :  { %2809 = vmatprep.subr.bf16.mxu0 %v2970_v9 }
 0x36f   :  { %2883 = vmatpush3.bf16.msra.mxu1 %v2882_v2 }
 0x370   :  { %2884 = vmatprep.subr.bf16.mxu1 %v2970_v9 }
 0x371   :  { %2811 = vmatpush3.bf16.msra.mxu0 %v2810_v19  ;;  %v1663_v19 = vld [vmem:[%s3767_s9 + $0x8] sm:$0xff] }
 0x372   :  { %2812 = vmatprep.subr.bf16.mxu0 %v2970_v9  ;;  %v2897_v21 = vpack.c.bf16 %v1663_v19, %v1662_v18 }
 0x373   :  { %2886 = vmatpush3.bf16.msra.mxu1 %v2885_v6 }
 0x374   :  { %2887 = vmatprep.subr.bf16.mxu1 %v2970_v9 }
 0x375   :  { %2814 = vmatpush3.bf16.msra.mxu0 %v2813_v22  ;;  %v1665_v22 = vld [vmem:[%s3767_s9 + $0x18] sm:$0xff] }
 0x376   :  { %2815 = vmatprep.subr.bf16.mxu0 %v2970_v9  ;;  %v2900_v23 = vpack.c.bf16 %v1665_v22, %v1664_v20 }
 0x377   :  { %2889 = vmatpush3.bf16.msra.mxu1 %v2888_v10 }
 0x378   :  { %2890 = vmatprep.subr.bf16.mxu1 %v2970_v9 }
 0x379   :  { %2817 = vmatpush3.bf16.msra.mxu0 %v2816_v25  ;;  %v1667_v25 = vld [vmem:[%s3767_s9 + $0x28] sm:$0xff] }
 0x37a   :  { %2818 = vmatprep.subr.bf16.mxu0 %v2970_v9  ;;  %v2903_v26 = vpack.c.bf16 %v1667_v25, %v1666_v24 }
 0x37b   :  { %2892 = vmatpush3.bf16.msra.mxu1 %v2891_v13 }
 0x37c   :  { %2893 = vmatprep.subr.bf16.mxu1 %v2970_v9 }
 0x37d   :  { %2820 = vmatpush3.bf16.msra.mxu0 %v2819_v28  ;;  %v1669_v28 = vld [vmem:[%s3767_s9 + $0x38] sm:$0xff] }
 0x37e   :  { %2821 = vmatprep.subr.bf16.mxu0 %v2970_v9  ;;  %v2906_v29 = vpack.c.bf16 %v1669_v28, %v1668_v27 }
 0x37f   :  { %2895 = vmatpush3.bf16.msra.mxu1 %v2894_v16 }
 0x380   :  { %2555 = vmatprep.subr.mxu1 %v2967_v5 }
 0x381   :  { %2824 = vmatpush3.bf16.msk.msra.mxu0 %vm3210_vm6, %v2822_v31 }
 0x382   :  { %2850 = vmatprep.subr.bf16.mxu0 %v2970_v9 }
 0x383   :  { %2556 = vmatpush3.msra.mxu1 %v1579_v17 }
 0x384   :  { %2455 = vmatmul.mubr.msk.f32.vlgmr.msra.gmra.mrb[6].mxu0 %vm1174_vm9, %v1176_v37 }
 0x385   :  { %2852 = vmatpush3.bf16.msra.mxu0 %v2851_v34  ;;  %2524 = vmatprep.mubr.msk.f32.mxu0 %vm2971_vm8, %v2967_v5 }
 0x386   :  { %2853 = vmatprep.subr.bf16.mxu0 %v2970_v9 }
 0x389   :  { %2855 = vmatpush3.bf16.msra.mxu0 %v2854_v39 }
 0x38a   :  { %2856 = vmatprep.subr.bf16.mxu0 %v2970_v9 }
 0x38d   :  { %2858 = vmatpush3.bf16.msra.mxu0 %v2857_v42 }
 0x38e   :  { %2859 = vmatprep.subr.bf16.mxu0 %v2970_v9 }
 0x391   :  { %2861 = vmatpush3.bf16.msra.mxu0 %v2860_v45  ;;  %v1671_v45 = vld [vmem:[%s3767_s9 + $0x48] sm:$0xff] }
 0x392   :  { %2862 = vmatprep.subr.bf16.mxu0 %v2970_v9 }
 0x395   :  { %2864 = vmatpush3.bf16.msra.mxu0 %v2863_v48  ;;  %v1941_v48 = vld [vmem:[%s3766_s8] ss:$0 sm:$0xff] }
 0x396   :  { %2865 = vmatprep.subr.bf16.mxu0 %v2970_v9 }
 0x399   :  { %2867 = vmatpush3.bf16.msra.mxu0 %v2866_v51 }
 0x39a   :  { %2868 = vmatprep.subr.bf16.mxu0 %v2970_v9 }
 0x39d   :  { %2870 = vmatpush3.bf16.msra.mxu0 %v2869_v54 }
 0x39e   :  { %2871 = vmatprep.subr.bf16.mxu0 %v2970_v9 }
 0x3a1   :  { %2874 = vmatpush3.bf16.msk.msra.mxu0 %vm3210_vm6, %v2872_v57 }
 0x3a2   :  { %2896 = vmatprep.subr.bf16.mxu0 %v2970_v9 }
 0x3a4   :  { %2525 = vmatmul.mubr.msk.f32.vlgmr.msra.gmra.mrb[8].mxu0 %vm1174_vm9, %v1461_v58 }
 0x3a5   :  { %2582 = vmatprep.mubr.msk.f32.mxu0 %vm2971_vm8, %v2967_v5  ;;  %2898 = vmatpush3.bf16.msra.mxu0 %v2897_v21 }
 0x3a6   :  { %2899 = vmatprep.subr.bf16.mxu0 %v2970_v9 }
 0x3a9   :  { %2901 = vmatpush3.bf16.msra.mxu0 %v2900_v23 }
 0x3aa   :  { %2902 = vmatprep.subr.bf16.mxu0 %v2970_v9 }
 0x3ad   :  { %2904 = vmatpush3.bf16.msra.mxu0 %v2903_v26 }
 0x3ae   :  { %2905 = vmatprep.subr.bf16.mxu0 %v2970_v9 }
 0x3b1   :  { %2907 = vmatpush3.bf16.msra.mxu0 %v2906_v29 }
 0x3b2   :  { %2908 = vmatprep.subr.bf16.mxu0 %v2970_v9  ;;  %v1670_v9 = vld [vmem:[%s3767_s9 + $0x40] sm:$0xff]  ;;  %s2972_s9 = smov [#allocation7]  }
 0x3b3   :  { %v2909_v46 = vpack.c.bf16 %v1671_v45, %v1670_v9  ;;  %s1767_s18 = sshll.u32 %s2972_s9, 4  ;;  %s1768_s18 = int_to_ptr.vmem [resolvable:$true] %s1767_s18 }
 0x3b4   :  { %s2943_s8 = scalar_lea.vmem %s1768_s18, 32  ;;  %p2948_p1 = scmp.lt.s32.totalorder %s1768_s18, %s1768_s18 }
 0x3b5   :  { %2910 = vmatpush3.bf16.msra.mxu0 %v2909_v46  ;;  %p2944_p0 = scmp.ne.s32.totalorder %s1768_s18, %s2943_s8  ;;  %p2949_p2 = scmp.lt.s32.totalorder %s2943_s8, %s2943_s8 }
 0x3b6   :  { %2580 = vmatprep.subr.mxu0 %v2967_v5  ;;  %v1943_v5 = vld [vmem:[%s3768_s10] ss:$0 sm:$0xff] }
 0x3b7   :  { %p2950_p3 = por %p2949_p2, %p2948_p1 }
 0x3b9   :  { %2581 = vmatpush3.msk.msra.mxu0 %vm1684_vm11, %v1672_v47  ;;  %p2951_p4 = pnand %p2950_p3, %p2944_p0 }
 0x437   :  { %v1284_v30 = vpop.f32.mrb[4].mxu0  ;;  %v1455_v31 = vpop.f32.mrb[2].mxu1 }
 0x438   :  { %v2421_v32 = vpop.f32.mrb[5].mxu0  ;;  %v2491_v33 = vpop.f32.mrb[3].mxu1 }
 0x457   :  { %v1360_v34 = vpop.f32.mrb[6].mxu0 }
 0x458   :  { %v1361_v35 = vadd.f32 %v1360_v34, %v1284_v30  ;;  %v2456_v36 = vpop.f32.mrb[7].mxu0 }
 0x45a   :  { %v1459_v37 = vadd.f32 %v1455_v31, %v1361_v35 }
 0x477   :  { %v1551_v39 = vpop.f32.mrb[8].mxu0 }
 0x478   :  { %v1555_v41 = vadd.f32 %v1551_v39, %v1459_v37  ;;  %v2526_v42 = vpop.f32.mrb[9].mxu0 }
 0x47a   :  { %v1563_v43 = vadd.f32 %v1940_v40, %v1555_v41 }
 0x47c   :  { %v1564_v44 = vmax.f32 %v1563_v43, 0.0 }
 0x47e   :  { %2558 = vmatmul.mubr.msk.f32.vlgmr.msra.gmra.mrb[4].mxu1 %vm1587_vm10, %v1564_v44 }
 0x551   :  { %v1657_v49 = vpop.f32.mrb[4].mxu1 }
 0x552   :  { %v1658_v50 = vadd.f32 %v1941_v48, %v1657_v49  ;;  %v2559_v51 = vpop.f32.mrb[5].mxu1 }
 0x554   :  { %v1661_v52 = vmax.f32 %v1658_v50, 0.0 }
 0x556   :  { %2583 = vmatmul.mubr.msk.f32.vlgmr.msra.gmra.mrb[10].mxu0 %vm1680_vm12, %v1661_v52 }
 0x629   :  { %v1754_v53 = vpop.f32.mrb[10].mxu0 }
 0x62a   :  { %v1755_v54 = vadd.f32 %v1943_v5, %v1754_v53  ;;  %v2584_v55 = vpop.f32.mrb[11].mxu0 }
 0x62c   :  { %2941 = vtanh.f32 %v1755_v54 }
 0x636   :  { %v2942_v56 = vpop.eup %2941 }
 0x637   :  { %1760 = vst.msk [vmem:[#allocation7] sm:$0x3] %vm1759_vm13, %v2942_v56 }
 0x638   :  { %2954 = shalt.err (!%p2951_p4)
}
 0x639   :  { %s2955_s10 = scalar_lea.hbm %s3769_s11, 32 }
 0x63a   :  { %p2956_p5 = scmp.ne.s32.totalorder %s3769_s11, %s2955_s10  ;;  %p2959_p6 = scmp.lt.u32.totalorder %s2955_s10, %s3769_s11 }
 0x63c   :  { %p2961_p7 = pnand %p2959_p6, %p2956_p5 }
 0x63e   :  { %2964 = shalt.err (!%p2961_p7)
}
 0x63f   :  { %1770 = dma.vmem_to_hbm [thread:$0]  %s1768_s18, 32, %s3769_s11, [#allocation8]  }
 0x640   :  { %2965 = dma.done.wait [#allocation8], 32  }
 0x641   :  { %2966 = vsyncadd [#allocation8], 4294967264 }
 0x642   :  { %1774 = vsyncpa [#allocation8], 1 }

</bundles_post_ra>
